<compile_context>
chip_gen: v7x
topology: tpu7x:2x2x1
jax: 0.10.0
libtpu: 0.0.40
codegen_flags: <defaults>
</compile_context>

<pallas_src>
import functools

import jax
import jax.numpy as jnp
from jax.experimental import pallas as pl
from jax.experimental.pallas import tpu as pltpu

NUM_CLASSES = 8     # stands in for len(classes), which is undefined in the reference file
BN_EPS = 1e-5       # PyTorch BatchNorm default
FC_PAD = 128        # lane-dense width for the final classifier output


# ----------------------------- Pallas kernel -------------------------------

def cnn_fused_kernel(x_ref, w1_ref, aux1_ref, w2_ref, aux2_ref, w3_ref, aux3_ref,
                     fc1w_ref, fc1b_ref, fc2w_ref, fc2b_ref, o_ref):
    """Fully-fused forward for one batch element (grid axis = batch).

    x_ref   : (1, W, C_in*H)        bf16   channel-last input slab
    w*_ref  : (3, Cin, Cout)        bf16   conv taps (shifted-matmul weights)
    aux*_ref: (3, Cout)             f32    rows = [bias, bn_scale, bn_shift]
    fc1w_ref: (512, 512)            bf16
    fc2w_ref: (512, 128)            bf16   zero-padded classifier weight
    o_ref   : (1, 1, 128)           f32
    """
    x = x_ref[0]                                    # (W, 50) bf16

    def conv_relu_bn(act, w_ref, aux_ref):
        # act: (L, Cin); conv as sum of 3 shifted matmuls -> ReLU -> folded BN.
        lo = act.shape[0] - 2
        acc = None
        for j in range(3):                          # static unroll, K taps
            part = jnp.dot(act[j:j + lo, :].astype(jnp.bfloat16), w_ref[j],
                           preferred_element_type=jnp.float32)
            acc = part if acc is None else acc + part
        aux = aux_ref[...]                          # (3, Cout) f32
        z = jnp.maximum(acc + aux[0:1, :], 0.0)     # bias + ReLU (f32)
        return z * aux[1:2, :] + aux[2:3, :]        # folded BatchNorm (f32)

    y1 = conv_relu_bn(x, w1_ref, aux1_ref)          # (W-2, 128)
    y2 = conv_relu_bn(y1, w2_ref, aux2_ref)         # (W-4, 256)
    y3 = conv_relu_bn(y2, w3_ref, aux3_ref)         # (W-6, 512)

    # AdaptiveAvgPool1d(1) -> Flatten
    pooled = jnp.mean(y3, axis=0, keepdims=True)    # (1, 512) f32

    # Linear(512,512) -> Dropout(identity) -> ReLU
    h = jnp.dot(pooled.astype(jnp.bfloat16), fc1w_ref[...],
                preferred_element_type=jnp.float32)
    h = jnp.maximum(h + fc1b_ref[...], 0.0)         # (1, 512) f32

    # Linear(512, NUM_CLASSES) padded to 128 lanes
    out = jnp.dot(h.astype(jnp.bfloat16), fc2w_ref[...],
                  preferred_element_type=jnp.float32)
    o_ref[0] = out + fc2b_ref[...]                  # (1, 128) f32


# --------------------------- pallas_call wrapper ----------------------------

def _full_spec(shape):
    # Whole-array block, constant block index (no re-DMA across grid steps).
    return pl.BlockSpec(shape, lambda b: (0,) * len(shape))


def cnn_forward(p, x):
    N, C, H, W = x.shape
    # Single layout change: NCHW -> channel-last (N, W, C*H), cast to bf16.
    x_cl = x.transpose(0, 3, 1, 2).reshape(N, W, C * H).astype(jnp.bfloat16)

    out = pl.pallas_call(
        cnn_fused_kernel,
        grid=(N,),
        in_specs=[
            pl.BlockSpec((1, W, C * H), lambda b: (b, 0, 0)),
            _full_spec(p['w1'].shape), _full_spec(p['aux1'].shape),
            _full_spec(p['w2'].shape), _full_spec(p['aux2'].shape),
            _full_spec(p['w3'].shape), _full_spec(p['aux3'].shape),
            _full_spec(p['fc1_w'].shape), _full_spec(p['fc1_b'].shape),
            _full_spec(p['fc2_w'].shape), _full_spec(p['fc2_b'].shape),
        ],
        out_specs=pl.BlockSpec((1, 1, FC_PAD), lambda b: (b, 0, 0)),
        out_shape=jax.ShapeDtypeStruct((N, 1, FC_PAD), jnp.float32),
        compiler_params=pltpu.CompilerParams(dimension_semantics=("parallel",)),
    )(x_cl, p['w1'], p['aux1'], p['w2'], p['aux2'], p['w3'], p['aux3'],
      p['fc1_w'], p['fc1_b'], p['fc2_w'], p['fc2_b'])

    return out[:, 0, :NUM_CLASSES]                  # (N, NUM_CLASSES)


# ----------------------- parameter preparation (once) -----------------------

def fold_bn(bn):
    scale = bn['gamma'] / jnp.sqrt(bn['running_var'] + BN_EPS)
    shift = bn['beta'] - bn['running_mean'] * scale
    return scale, shift


def prepare_params(params):
    """One-time weight reshape/transpose/cast (outside jit, per review)."""
    s1, t1 = fold_bn(params['bn1'])
    s2, t2 = fold_bn(params['bn2'])
    s3, t3 = fold_bn(params['bn3'])

    # Conv2d(2,128,(25,3)): per kw-tap j, weight (2*25, 128) matching the
    # channel-last input flattening [c*H + h].
    w1 = jnp.stack([params['conv1_w'][:, :, :, j].reshape(128, -1).T
                    for j in range(3)], axis=0)                    # (3, 50, 128)
    # Conv1d weights (Cout, Cin, K) -> (K, Cin, Cout)
    w2 = params['conv2_w'].transpose(2, 1, 0)                      # (3, 128, 256)
    w3 = params['conv3_w'].transpose(2, 1, 0)                      # (3, 256, 512)

    fc2_w = jnp.zeros((512, FC_PAD), jnp.float32).at[:, :NUM_CLASSES].set(params['fc2_w'].T)
    fc2_b = jnp.zeros((1, FC_PAD), jnp.float32).at[0, :NUM_CLASSES].set(params['fc2_b'])

    return dict(
        w1=w1.astype(jnp.bfloat16),
        aux1=jnp.stack([params['conv1_b'], s1, t1], axis=0),       # (3, 128) f32
        w2=w2.astype(jnp.bfloat16),
        aux2=jnp.stack([params['conv2_b'], s2, t2], axis=0),       # (3, 256) f32
        w3=w3.astype(jnp.bfloat16),
        aux3=jnp.stack([params['conv3_b'], s3, t3], axis=0),       # (3, 512) f32
        fc1_w=params['fc1_w'].T.astype(jnp.bfloat16),              # (512, 512)
        fc1_b=params['fc1_b'].reshape(1, 512),
        fc2_w=fc2_w.astype(jnp.bfloat16),                          # (512, 128)
        fc2_b=fc2_b,                                               # (1, 128) f32
    )


# --------------------------- params & reference -----------------------------

def init_params(key):
    ks = jax.random.split(key, 12)

    def nrm(k, shape, scale=0.05):
        return scale * jax.random.normal(k, shape, dtype=jnp.float32)

    def bn(k, c):
        k1, k2, k3 = jax.random.split(k, 3)
        return dict(gamma=1.0 + 0.1 * jax.random.normal(k1, (c,), jnp.float32),
                    beta=0.1 * jax.random.normal(k2, (c,), jnp.float32),
                    running_mean=0.1 * jax.random.normal(k3, (c,), jnp.float32),
                    running_var=jnp.ones((c,), jnp.float32))

    return dict(
        conv1_w=nrm(ks[0], (128, 2, 25, 3)), conv1_b=nrm(ks[1], (128,)), bn1=bn(ks[2], 128),
        conv2_w=nrm(ks[3], (256, 128, 3)),   conv2_b=nrm(ks[4], (256,)), bn2=bn(ks[5], 256),
        conv3_w=nrm(ks[6], (512, 256, 3)),   conv3_b=nrm(ks[7], (512,)), bn3=bn(ks[8], 512),
        fc1_w=nrm(ks[9], (512, 512)),        fc1_b=nrm(ks[10], (512,)),
        fc2_w=nrm(ks[11], (NUM_CLASSES, 512)), fc2_b=jnp.zeros((NUM_CLASSES,), jnp.float32),
    )


def reference_forward(params, x):
    # Pure-JAX reference (f32 lax convs) to check the Pallas kernel math.
    hp = jax.lax.Precision.HIGHEST

    def bn_apply(z, bn, axis):
        shape = [1] * z.ndim
        shape[axis] = -1
        scale, shift = fold_bn(bn)
        return z * scale.reshape(shape) + shift.reshape(shape)

    y = jax.lax.conv_general_dilated(x, params['conv1_w'], (1, 1), 'VALID',
                                     dimension_numbers=('NCHW', 'OIHW', 'NCHW'), precision=hp)
    y = jnp.maximum(y + params['conv1_b'].reshape(1, -1, 1, 1), 0.0)
    y = bn_apply(y, params['bn1'], 1)
    y = jnp.squeeze(y, axis=2)                                     # (N, 128, Wo)

    def conv1d(z, w, b):
        o = jax.lax.conv_general_dilated(z[:, :, None, :], w[:, :, None, :], (1, 1), 'VALID',
                                         dimension_numbers=('NCHW', 'OIHW', 'NCHW'), precision=hp)
        return o[:, :, 0, :] + b.reshape(1, -1, 1)

    y = bn_apply(jnp.maximum(conv1d(y, params['conv2_w'], params['conv2_b']), 0.0), params['bn2'], 1)
    y = bn_apply(jnp.maximum(conv1d(y, params['conv3_w'], params['conv3_b']), 0.0), params['bn3'], 1)
    pooled = jnp.mean(y, axis=2)                                   # (N, 512)
    h = jnp.maximum(jnp.dot(pooled, params['fc1_w'].T, precision=hp) + params['fc1_b'], 0.0)
    return jnp.dot(h, params['fc2_w'].T, precision=hp) + params['fc2_b']


if __name__ == "__main__":
    key = jax.random.PRNGKey(0)
    pkey, xkey = jax.random.split(key)
    params = init_params(pkey)
    prepped = prepare_params(params)   # one-time weight layout/cast, outside jit

    # Input must have H == 25 so Conv2d(kernel=(25,3)) yields height 1 (the
    # reference forward squeezes dim=2).  Small shape: batch=2, C=2, H=25, W=16.
    x = jax.random.normal(xkey, (2, 2, 25, 16), dtype=jnp.float32)

    out = jax.jit(functools.partial(cnn_forward, prepped))(x)
    out = jax.block_until_ready(out)

    ref = reference_forward(params, x)
    assert out.shape == (2, NUM_CLASSES), out.shape
    # Tolerance covers bf16 MXU operands with f32 accumulation vs. the f32 reference.
    assert jnp.allclose(out, ref, atol=2e-2, rtol=2e-2), (out, ref)
    print("KERNEL_OK")
</pallas_src>

<mosaic_0001>
module attributes {stable_mosaic.version = 11 : i64} {
  func.func @cnn_fused_kernel(%arg0: i32, %arg1: memref<1x16x50xbf16, #tpu.memory_space<vmem>>, %arg2: memref<3x50x128xbf16, #tpu.memory_space<vmem>>, %arg3: memref<3x128xf32, #tpu.memory_space<vmem>>, %arg4: memref<3x128x256xbf16, #tpu.memory_space<vmem>>, %arg5: memref<3x256xf32, #tpu.memory_space<vmem>>, %arg6: memref<3x256x512xbf16, #tpu.memory_space<vmem>>, %arg7: memref<3x512xf32, #tpu.memory_space<vmem>>, %arg8: memref<512x512xbf16, #tpu.memory_space<vmem>>, %arg9: memref<1x512xf32, #tpu.memory_space<vmem>>, %arg10: memref<512x128xbf16, #tpu.memory_space<vmem>>, %arg11: memref<1x128xf32, #tpu.memory_space<vmem>>, %arg12: memref<1x1x128xf32, #tpu.memory_space<vmem>>) attributes {dimension_semantics = [#tpu.dimension_semantics<parallel>], iteration_bounds = array<i64: 2>, scalar_prefetch = 0 : i64, scratch_operands = 0 : i64, tpu.core_type = #tpu.core_type<tc>, window_params = [{transform_indices = @transform_0, window_bounds = array<i64: 1, 16, 50>}, {pipeline_mode = #tpu.pipeline_mode<synchronous>, transform_indices = @transform_1, window_bounds = array<i64: 3, 50, 128>}, {pipeline_mode = #tpu.pipeline_mode<synchronous>, transform_indices = @transform_2, window_bounds = array<i64: 3, 128>}, {pipeline_mode = #tpu.pipeline_mode<synchronous>, transform_indices = @transform_3, window_bounds = array<i64: 3, 128, 256>}, {pipeline_mode = #tpu.pipeline_mode<synchronous>, transform_indices = @transform_4, window_bounds = array<i64: 3, 256>}, {pipeline_mode = #tpu.pipeline_mode<synchronous>, transform_indices = @transform_5, window_bounds = array<i64: 3, 256, 512>}, {pipeline_mode = #tpu.pipeline_mode<synchronous>, transform_indices = @transform_6, window_bounds = array<i64: 3, 512>}, {pipeline_mode = #tpu.pipeline_mode<synchronous>, transform_indices = @transform_7, window_bounds = array<i64: 512, 512>}, {pipeline_mode = #tpu.pipeline_mode<synchronous>, transform_indices = @transform_8, window_bounds = array<i64: 1, 512>}, {pipeline_mode = #tpu.pipeline_mode<synchronous>, transform_indices = @transform_9, window_bounds = array<i64: 512, 128>}, {pipeline_mode = #tpu.pipeline_mode<synchronous>, transform_indices = @transform_10, window_bounds = array<i64: 1, 128>}, {transform_indices = @transform_11, window_bounds = array<i64: 1, 1, 128>}]} {
    %c0 = arith.constant 0 : index
    %c0_0 = arith.constant 0 : index
    %c0_1 = arith.constant 0 : index
    %0 = vector.load %arg1[%c0, %c0_0, %c0_1] : memref<1x16x50xbf16, #tpu.memory_space<vmem>>, vector<1x16x50xbf16>
    %1 = vector.shape_cast %0 : vector<1x16x50xbf16> to vector<16x50xbf16>
    %2 = vector.extract_strided_slice %1 {offsets = [0, 0], sizes = [14, 50], strides = [1, 1]} : vector<16x50xbf16> to vector<14x50xbf16>
    %c0_2 = arith.constant 0 : index
    %c0_3 = arith.constant 0 : index
    %c0_4 = arith.constant 0 : index
    %3 = vector.load %arg2[%c0_2, %c0_3, %c0_4] : memref<3x50x128xbf16, #tpu.memory_space<vmem>>, vector<1x50x128xbf16>
    %4 = vector.shape_cast %3 : vector<1x50x128xbf16> to vector<50x128xbf16>
    %cst = arith.constant dense<0.000000e+00> : vector<14x128xf32>
    %5 = tpu.matmul %2, %4, %cst {dimension_numbers = #tpu.dot_dimension_numbers<[1], [0], [0], [1], [0, 0, 1, 1], [], []>} : vector<14x50xbf16>, vector<50x128xbf16>, vector<14x128xf32> -> vector<14x128xf32>
    %6 = vector.extract_strided_slice %1 {offsets = [1, 0], sizes = [14, 50], strides = [1, 1]} : vector<16x50xbf16> to vector<14x50xbf16>
    %c1 = arith.constant 1 : index
    %c0_5 = arith.constant 0 : index
    %c0_6 = arith.constant 0 : index
    %7 = vector.load %arg2[%c1, %c0_5, %c0_6] : memref<3x50x128xbf16, #tpu.memory_space<vmem>>, vector<1x50x128xbf16>
    %8 = vector.shape_cast %7 : vector<1x50x128xbf16> to vector<50x128xbf16>
    %cst_7 = arith.constant dense<0.000000e+00> : vector<14x128xf32>
    %9 = tpu.matmul %6, %8, %cst_7 {dimension_numbers = #tpu.dot_dimension_numbers<[1], [0], [0], [1], [0, 0, 1, 1], [], []>} : vector<14x50xbf16>, vector<50x128xbf16>, vector<14x128xf32> -> vector<14x128xf32>
    %10 = arith.addf %5, %9 : vector<14x128xf32>
    %11 = vector.extract_strided_slice %1 {offsets = [2, 0], sizes = [14, 50], strides = [1, 1]} : vector<16x50xbf16> to vector<14x50xbf16>
    %c2 = arith.constant 2 : index
    %c0_8 = arith.constant 0 : index
    %c0_9 = arith.constant 0 : index
    %12 = vector.load %arg2[%c2, %c0_8, %c0_9] : memref<3x50x128xbf16, #tpu.memory_space<vmem>>, vector<1x50x128xbf16>
    %13 = vector.shape_cast %12 : vector<1x50x128xbf16> to vector<50x128xbf16>
    %cst_10 = arith.constant dense<0.000000e+00> : vector<14x128xf32>
    %14 = tpu.matmul %11, %13, %cst_10 {dimension_numbers = #tpu.dot_dimension_numbers<[1], [0], [0], [1], [0, 0, 1, 1], [], []>} : vector<14x50xbf16>, vector<50x128xbf16>, vector<14x128xf32> -> vector<14x128xf32>
    %15 = arith.addf %10, %14 : vector<14x128xf32>
    %c0_11 = arith.constant 0 : index
    %c0_12 = arith.constant 0 : index
    %16 = vector.load %arg3[%c0_11, %c0_12] : memref<3x128xf32, #tpu.memory_space<vmem>>, vector<3x128xf32>
    %17 = vector.extract_strided_slice %16 {offsets = [0, 0], sizes = [1, 128], strides = [1, 1]} : vector<3x128xf32> to vector<1x128xf32>
    %18 = vector.broadcast %17 : vector<1x128xf32> to vector<14x128xf32>
    %19 = arith.addf %15, %18 : vector<14x128xf32>
    %cst_13 = arith.constant 0.000000e+00 : f32
    %20 = vector.broadcast %cst_13 : f32 to vector<14x128xf32>
    %21 = arith.maximumf %19, %20 : vector<14x128xf32>
    %22 = vector.extract_strided_slice %16 {offsets = [1, 0], sizes = [1, 128], strides = [1, 1]} : vector<3x128xf32> to vector<1x128xf32>
    %23 = vector.broadcast %22 : vector<1x128xf32> to vector<14x128xf32>
    %24 = arith.mulf %21, %23 : vector<14x128xf32>
    %25 = vector.extract_strided_slice %16 {offsets = [2, 0], sizes = [1, 128], strides = [1, 1]} : vector<3x128xf32> to vector<1x128xf32>
    %26 = vector.broadcast %25 : vector<1x128xf32> to vector<14x128xf32>
    %27 = arith.addf %24, %26 : vector<14x128xf32>
    %28 = vector.extract_strided_slice %27 {offsets = [0, 0], sizes = [12, 128], strides = [1, 1]} : vector<14x128xf32> to vector<12x128xf32>
    %29 = arith.truncf %28 : vector<12x128xf32> to vector<12x128xbf16>
    %c0_14 = arith.constant 0 : index
    %c0_15 = arith.constant 0 : index
    %c0_16 = arith.constant 0 : index
    %30 = vector.load %arg4[%c0_14, %c0_15, %c0_16] : memref<3x128x256xbf16, #tpu.memory_space<vmem>>, vector<1x128x256xbf16>
    %31 = vector.shape_cast %30 : vector<1x128x256xbf16> to vector<128x256xbf16>
    %cst_17 = arith.constant dense<0.000000e+00> : vector<12x256xf32>
    %32 = tpu.matmul %29, %31, %cst_17 {dimension_numbers = #tpu.dot_dimension_numbers<[1], [0], [0], [1], [0, 0, 1, 1], [], []>} : vector<12x128xbf16>, vector<128x256xbf16>, vector<12x256xf32> -> vector<12x256xf32>
    %33 = vector.extract_strided_slice %27 {offsets = [1, 0], sizes = [12, 128], strides = [1, 1]} : vector<14x128xf32> to vector<12x128xf32>
    %34 = arith.truncf %33 : vector<12x128xf32> to vector<12x128xbf16>
    %c1_18 = arith.constant 1 : index
    %c0_19 = arith.constant 0 : index
    %c0_20 = arith.constant 0 : index
    %35 = vector.load %arg4[%c1_18, %c0_19, %c0_20] : memref<3x128x256xbf16, #tpu.memory_space<vmem>>, vector<1x128x256xbf16>
    %36 = vector.shape_cast %35 : vector<1x128x256xbf16> to vector<128x256xbf16>
    %cst_21 = arith.constant dense<0.000000e+00> : vector<12x256xf32>
    %37 = tpu.matmul %34, %36, %cst_21 {dimension_numbers = #tpu.dot_dimension_numbers<[1], [0], [0], [1], [0, 0, 1, 1], [], []>} : vector<12x128xbf16>, vector<128x256xbf16>, vector<12x256xf32> -> vector<12x256xf32>
    %38 = arith.addf %32, %37 : vector<12x256xf32>
    %39 = vector.extract_strided_slice %27 {offsets = [2, 0], sizes = [12, 128], strides = [1, 1]} : vector<14x128xf32> to vector<12x128xf32>
    %40 = arith.truncf %39 : vector<12x128xf32> to vector<12x128xbf16>
    %c2_22 = arith.constant 2 : index
    %c0_23 = arith.constant 0 : index
    %c0_24 = arith.constant 0 : index
    %41 = vector.load %arg4[%c2_22, %c0_23, %c0_24] : memref<3x128x256xbf16, #tpu.memory_space<vmem>>, vector<1x128x256xbf16>
    %42 = vector.shape_cast %41 : vector<1x128x256xbf16> to vector<128x256xbf16>
    %cst_25 = arith.constant dense<0.000000e+00> : vector<12x256xf32>
    %43 = tpu.matmul %40, %42, %cst_25 {dimension_numbers = #tpu.dot_dimension_numbers<[1], [0], [0], [1], [0, 0, 1, 1], [], []>} : vector<12x128xbf16>, vector<128x256xbf16>, vector<12x256xf32> -> vector<12x256xf32>
    %44 = arith.addf %38, %43 : vector<12x256xf32>
    %c0_26 = arith.constant 0 : index
    %c0_27 = arith.constant 0 : index
    %45 = vector.load %arg5[%c0_26, %c0_27] : memref<3x256xf32, #tpu.memory_space<vmem>>, vector<3x256xf32>
    %46 = vector.extract_strided_slice %45 {offsets = [0, 0], sizes = [1, 256], strides = [1, 1]} : vector<3x256xf32> to vector<1x256xf32>
    %47 = vector.broadcast %46 : vector<1x256xf32> to vector<12x256xf32>
    %48 = arith.addf %44, %47 : vector<12x256xf32>
    %cst_28 = arith.constant 0.000000e+00 : f32
    %49 = vector.broadcast %cst_28 : f32 to vector<12x256xf32>
    %50 = arith.maximumf %48, %49 : vector<12x256xf32>
    %51 = vector.extract_strided_slice %45 {offsets = [1, 0], sizes = [1, 256], strides = [1, 1]} : vector<3x256xf32> to vector<1x256xf32>
    %52 = vector.broadcast %51 : vector<1x256xf32> to vector<12x256xf32>
    %53 = arith.mulf %50, %52 : vector<12x256xf32>
    %54 = vector.extract_strided_slice %45 {offsets = [2, 0], sizes = [1, 256], strides = [1, 1]} : vector<3x256xf32> to vector<1x256xf32>
    %55 = vector.broadcast %54 : vector<1x256xf32> to vector<12x256xf32>
    %56 = arith.addf %53, %55 : vector<12x256xf32>
    %57 = vector.extract_strided_slice %56 {offsets = [0, 0], sizes = [10, 256], strides = [1, 1]} : vector<12x256xf32> to vector<10x256xf32>
    %58 = arith.truncf %57 : vector<10x256xf32> to vector<10x256xbf16>
    %c0_29 = arith.constant 0 : index
    %c0_30 = arith.constant 0 : index
    %c0_31 = arith.constant 0 : index
    %59 = vector.load %arg6[%c0_29, %c0_30, %c0_31] : memref<3x256x512xbf16, #tpu.memory_space<vmem>>, vector<1x256x512xbf16>
    %60 = vector.shape_cast %59 : vector<1x256x512xbf16> to vector<256x512xbf16>
    %cst_32 = arith.constant dense<0.000000e+00> : vector<10x512xf32>
    %61 = tpu.matmul %58, %60, %cst_32 {dimension_numbers = #tpu.dot_dimension_numbers<[1], [0], [0], [1], [0, 0, 1, 1], [], []>} : vector<10x256xbf16>, vector<256x512xbf16>, vector<10x512xf32> -> vector<10x512xf32>
    %62 = vector.extract_strided_slice %56 {offsets = [1, 0], sizes = [10, 256], strides = [1, 1]} : vector<12x256xf32> to vector<10x256xf32>
    %63 = arith.truncf %62 : vector<10x256xf32> to vector<10x256xbf16>
    %c1_33 = arith.constant 1 : index
    %c0_34 = arith.constant 0 : index
    %c0_35 = arith.constant 0 : index
    %64 = vector.load %arg6[%c1_33, %c0_34, %c0_35] : memref<3x256x512xbf16, #tpu.memory_space<vmem>>, vector<1x256x512xbf16>
    %65 = vector.shape_cast %64 : vector<1x256x512xbf16> to vector<256x512xbf16>
    %cst_36 = arith.constant dense<0.000000e+00> : vector<10x512xf32>
    %66 = tpu.matmul %63, %65, %cst_36 {dimension_numbers = #tpu.dot_dimension_numbers<[1], [0], [0], [1], [0, 0, 1, 1], [], []>} : vector<10x256xbf16>, vector<256x512xbf16>, vector<10x512xf32> -> vector<10x512xf32>
    %67 = arith.addf %61, %66 : vector<10x512xf32>
    %68 = vector.extract_strided_slice %56 {offsets = [2, 0], sizes = [10, 256], strides = [1, 1]} : vector<12x256xf32> to vector<10x256xf32>
    %69 = arith.truncf %68 : vector<10x256xf32> to vector<10x256xbf16>
    %c2_37 = arith.constant 2 : index
    %c0_38 = arith.constant 0 : index
    %c0_39 = arith.constant 0 : index
    %70 = vector.load %arg6[%c2_37, %c0_38, %c0_39] : memref<3x256x512xbf16, #tpu.memory_space<vmem>>, vector<1x256x512xbf16>
    %71 = vector.shape_cast %70 : vector<1x256x512xbf16> to vector<256x512xbf16>
    %cst_40 = arith.constant dense<0.000000e+00> : vector<10x512xf32>
    %72 = tpu.matmul %69, %71, %cst_40 {dimension_numbers = #tpu.dot_dimension_numbers<[1], [0], [0], [1], [0, 0, 1, 1], [], []>} : vector<10x256xbf16>, vector<256x512xbf16>, vector<10x512xf32> -> vector<10x512xf32>
    %73 = arith.addf %67, %72 : vector<10x512xf32>
    %c0_41 = arith.constant 0 : index
    %c0_42 = arith.constant 0 : index
    %74 = vector.load %arg7[%c0_41, %c0_42] : memref<3x512xf32, #tpu.memory_space<vmem>>, vector<3x512xf32>
    %75 = vector.extract_strided_slice %74 {offsets = [0, 0], sizes = [1, 512], strides = [1, 1]} : vector<3x512xf32> to vector<1x512xf32>
    %76 = vector.broadcast %75 : vector<1x512xf32> to vector<10x512xf32>
    %77 = arith.addf %73, %76 : vector<10x512xf32>
    %cst_43 = arith.constant 0.000000e+00 : f32
    %78 = vector.broadcast %cst_43 : f32 to vector<10x512xf32>
    %79 = arith.maximumf %77, %78 : vector<10x512xf32>
    %80 = vector.extract_strided_slice %74 {offsets = [1, 0], sizes = [1, 512], strides = [1, 1]} : vector<3x512xf32> to vector<1x512xf32>
    %81 = vector.broadcast %80 : vector<1x512xf32> to vector<10x512xf32>
    %82 = arith.mulf %79, %81 : vector<10x512xf32>
    %83 = vector.extract_strided_slice %74 {offsets = [2, 0], sizes = [1, 512], strides = [1, 1]} : vector<3x512xf32> to vector<1x512xf32>
    %84 = vector.broadcast %83 : vector<1x512xf32> to vector<10x512xf32>
    %85 = arith.addf %82, %84 : vector<10x512xf32>
    %cst_44 = arith.constant dense<0.000000e+00> : vector<512xf32>
    %86 = vector.multi_reduction <add>, %85, %cst_44 [0] : vector<10x512xf32> to vector<512xf32>
    %87 = vector.shape_cast %86 : vector<512xf32> to vector<1x512xf32>
    %cst_45 = arith.constant 1.000000e+01 : f32
    %88 = vector.broadcast %cst_45 : f32 to vector<1x512xf32>
    %89 = arith.divf %87, %88 : vector<1x512xf32>
    %90 = arith.truncf %89 : vector<1x512xf32> to vector<1x512xbf16>
    %c0_46 = arith.constant 0 : index
    %c0_47 = arith.constant 0 : index
    %91 = vector.load %arg8[%c0_46, %c0_47] : memref<512x512xbf16, #tpu.memory_space<vmem>>, vector<512x512xbf16>
    %cst_48 = arith.constant dense<0.000000e+00> : vector<1x512xf32>
    %92 = tpu.matmul %90, %91, %cst_48 {dimension_numbers = #tpu.dot_dimension_numbers<[1], [0], [0], [1], [0, 0, 1, 1], [], []>} : vector<1x512xbf16>, vector<512x512xbf16>, vector<1x512xf32> -> vector<1x512xf32>
    %c0_49 = arith.constant 0 : index
    %c0_50 = arith.constant 0 : index
    %93 = vector.load %arg9[%c0_49, %c0_50] : memref<1x512xf32, #tpu.memory_space<vmem>>, vector<1x512xf32>
    %94 = arith.addf %92, %93 : vector<1x512xf32>
    %cst_51 = arith.constant 0.000000e+00 : f32
    %95 = vector.broadcast %cst_51 : f32 to vector<1x512xf32>
    %96 = arith.maximumf %94, %95 : vector<1x512xf32>
    %97 = arith.truncf %96 : vector<1x512xf32> to vector<1x512xbf16>
    %c0_52 = arith.constant 0 : index
    %c0_53 = arith.constant 0 : index
    %98 = vector.load %arg10[%c0_52, %c0_53] : memref<512x128xbf16, #tpu.memory_space<vmem>>, vector<512x128xbf16>
    %cst_54 = arith.constant dense<0.000000e+00> : vector<1x128xf32>
    %99 = tpu.matmul %97, %98, %cst_54 {dimension_numbers = #tpu.dot_dimension_numbers<[1], [0], [0], [1], [0, 0, 1, 1], [], []>} : vector<1x512xbf16>, vector<512x128xbf16>, vector<1x128xf32> -> vector<1x128xf32>
    %c0_55 = arith.constant 0 : index
    %c0_56 = arith.constant 0 : index
    %100 = vector.load %arg11[%c0_55, %c0_56] : memref<1x128xf32, #tpu.memory_space<vmem>>, vector<1x128xf32>
    %101 = arith.addf %99, %100 : vector<1x128xf32>
    %c0_57 = arith.constant 0 : index
    %c0_58 = arith.constant 0 : index
    %c0_59 = arith.constant 0 : index
    %102 = vector.load %arg12[%c0_57, %c0_58, %c0_59] : memref<1x1x128xf32, #tpu.memory_space<vmem>>, vector<1x1x128xf32>
    %103 = vector.shape_cast %102 : vector<1x1x128xf32> to vector<1x128xf32>
    %104 = vector.shape_cast %101 : vector<1x128xf32> to vector<1x1x128xf32>
    tpu.vector_store %arg12[%c0_57, %c0_58, %c0_59], %104 {strides = array<i32>} : memref<1x1x128xf32, #tpu.memory_space<vmem>>, vector<1x1x128xf32>,
    return
  }
  func.func @transform_0(%arg0: i32) -> (i32, i32, i32) {
    %c0_i32 = arith.constant 0 : i32
    %c0_i32_0 = arith.constant 0 : i32
    %c0_i32_1 = arith.constant 0 : i32
    return %arg0, %c0_i32, %c0_i32_0 : i32, i32, i32
  }
  func.func @transform_1(%arg0: i32) -> (i32, i32, i32) {
    %c0_i32 = arith.constant 0 : i32
    %c0_i32_0 = arith.constant 0 : i32
    %c0_i32_1 = arith.constant 0 : i32
    %c0_i32_2 = arith.constant 0 : i32
    return %c0_i32, %c0_i32_0, %c0_i32_1 : i32, i32, i32
  }
  func.func @transform_2(%arg0: i32) -> (i32, i32) {
    %c0_i32 = arith.constant 0 : i32
    %c0_i32_0 = arith.constant 0 : i32
    %c0_i32_1 = arith.constant 0 : i32
    return %c0_i32, %c0_i32_0 : i32, i32
  }
  func.func @transform_3(%arg0: i32) -> (i32, i32, i32) {
    %c0_i32 = arith.constant 0 : i32
    %c0_i32_0 = arith.constant 0 : i32
    %c0_i32_1 = arith.constant 0 : i32
    %c0_i32_2 = arith.constant 0 : i32
    return %c0_i32, %c0_i32_0, %c0_i32_1 : i32, i32, i32
  }
  func.func @transform_4(%arg0: i32) -> (i32, i32) {
    %c0_i32 = arith.constant 0 : i32
    %c0_i32_0 = arith.constant 0 : i32
    %c0_i32_1 = arith.constant 0 : i32
    return %c0_i32, %c0_i32_0 : i32, i32
  }
  func.func @transform_5(%arg0: i32) -> (i32, i32, i32) {
    %c0_i32 = arith.constant 0 : i32
    %c0_i32_0 = arith.constant 0 : i32
    %c0_i32_1 = arith.constant 0 : i32
    %c0_i32_2 = arith.constant 0 : i32
    return %c0_i32, %c0_i32_0, %c0_i32_1 : i32, i32, i32
  }
  func.func @transform_6(%arg0: i32) -> (i32, i32) {
    %c0_i32 = arith.constant 0 : i32
    %c0_i32_0 = arith.constant 0 : i32
    %c0_i32_1 = arith.constant 0 : i32
    return %c0_i32, %c0_i32_0 : i32, i32
  }
  func.func @transform_7(%arg0: i32) -> (i32, i32) {
    %c0_i32 = arith.constant 0 : i32
    %c0_i32_0 = arith.constant 0 : i32
    %c0_i32_1 = arith.constant 0 : i32
    return %c0_i32, %c0_i32_0 : i32, i32
  }
  func.func @transform_8(%arg0: i32) -> (i32, i32) {
    %c0_i32 = arith.constant 0 : i32
    %c0_i32_0 = arith.constant 0 : i32
    %c0_i32_1 = arith.constant 0 : i32
    return %c0_i32, %c0_i32_0 : i32, i32
  }
  func.func @transform_9(%arg0: i32) -> (i32, i32) {
    %c0_i32 = arith.constant 0 : i32
    %c0_i32_0 = arith.constant 0 : i32
    %c0_i32_1 = arith.constant 0 : i32
    return %c0_i32, %c0_i32_0 : i32, i32
  }
  func.func @transform_10(%arg0: i32) -> (i32, i32) {
    %c0_i32 = arith.constant 0 : i32
    %c0_i32_0 = arith.constant 0 : i32
    %c0_i32_1 = arith.constant 0 : i32
    return %c0_i32, %c0_i32_0 : i32, i32
  }
  func.func @transform_11(%arg0: i32) -> (i32, i32, i32) {
    %c0_i32 = arith.constant 0 : i32
    %c0_i32_0 = arith.constant 0 : i32
    %c0_i32_1 = arith.constant 0 : i32
    return %arg0, %c0_i32, %c0_i32_0 : i32, i32, i32
  }
}

</mosaic_0001>

<bundles_post_ra>
// kernel: cnn_forward.1
= control target key start
LH: loop header
LB: loop body
LE: loop exit
PB: predicated region body
PF: predicated region fallthrough
CT: control target
= control target key end

     0   :  { %16 = vsyncpa [#allocation3], 0  ;;  %s7135_s0 = inlined_call_operand.vmem [shape: bf16[2,16,50], index: 0, kind: input, shape index: {}]   ;;  %s7136_s1 = inlined_call_operand.vmem [shape: bf16[3,50,128], index: 1, kind: input, shape index: {}]   ;;  %s7137_s2 = inlined_call_operand.vmem [shape: f32[3,128], index: 2, kind: input, shape index: {}]   ;;  %s7138_s3 = inlined_call_operand.vmem [shape: bf16[3,128,256], index: 3, kind: input, shape index: {}]   ;;  %s7139_s4 = inlined_call_operand.vmem [shape: f32[3,256], index: 4, kind: input, shape index: {}]   ;;  %s7140_s5 = inlined_call_operand.vmem [shape: bf16[3,256,512], index: 5, kind: input, shape index: {}]   ;;  %s7141_s6 = inlined_call_operand.vmem [shape: f32[3,512], index: 6, kind: input, shape index: {}]   ;;  %s7142_s7 = inlined_call_operand.vmem [shape: bf16[512,512], index: 7, kind: input, shape index: {}]   ;;  %s7143_s8 = inlined_call_operand.vmem [shape: f32[1,512], index: 8, kind: input, shape index: {}]   ;;  %s7144_s9 = inlined_call_operand.vmem [shape: bf16[512,128], index: 9, kind: input, shape index: {}]   ;;  %s7145_s10 = inlined_call_operand.vmem [shape: f32[1,128], index: 10, kind: input, shape index: {}]   ;;  %s7146_s11 = inlined_call_operand.hbm [shape: f32[2,1,128], index: 11, kind: output, shape index: {}]  }
   0x1   :  { %18 = vsyncpa [#allocation3 + $0x1], 0  ;;  %s5654_s17 = smov 0   ;;  %s5656_s18 = smov 0  }
   0x2   :  { %s5658_s19 = smov 0   ;;  %s5660_s20 = smov 0  }
   0x3 LB: > { %s5675_s21 = sadd.s32 4294967295, %s5588_s20   ;;  %s4156_s22 = sadd.s32 4294967294, %s5588_s20   ;;  %s5588_s20 = sphi %s5660_s20, %s7154_s20   ;;  %s5584_s19 = sphi %s5658_s19, %s7153_s19   ;;  %s5580_s18 = sphi %s5656_s18, %s7152_s18   ;;  %s5576_s17 = sphi %s5654_s17, %s7151_s17  }
   0x4   : > { %s5679_s23 = sadd.s32 1, %s5588_s20   ;;  %s267_s24 = sadd.s32 1, %s5584_s19 }
   0x5   : > { %s264_s25 = ssub.s32 %s5588_s20, %s5679_s23  ;;  %p277_p0 = scmp.ne.s32.totalorder %s5584_s19, %s5580_s18 }
   0x6   : > { %p265_p1 = scmp.eq.s32.totalorder %s264_s25, 0  ;;  %p278_p2 = scmp.eq.s32.totalorder %s5675_s21, 1 }
   0x7   : > { %p283_p3 = scmp.ne.s32.totalorder %s5580_s18, %s5576_s17  ;;  %p284_p4 = scmp.eq.s32.totalorder %s4156_s22, 1 }
   0x8   : > { %s5690_s26 = scalar_select %p265_p1, %s5584_s19, %s267_s24  }
   0x9   : > { %p5692_p5 = por %p278_p2, %p277_p0  ;;  %p5696_p6 = por %p284_p4, %p283_p3 }
   0xa   : > { %7147 = sst [smem:[#allocation5_spill]] %s5690_s26  ;;  %p4159_p7 = scmp.ge.s32.totalorder %s5588_s20, 1 }
   0xb   : > { %p340_p8 = scmp.lt.s32.totalorder %s5588_s20, 3 }
   0xd   : > { %p341_p9 = pnand %p4159_p7, %p340_p8 }
   0xe   : > { %v4929_v0 = vld [vmem:[%s7136_s1 + $0x1c] sm:$0xff] (!%p341_p9)   ;;  %v5590_v1 = vmov (!%p341_p9), 0.0   ;;  %v4931_v3 = vld [vmem:[%s7136_s1 + $0x24] sm:$0xff] (!%p341_p9)   ;;  %p379_p10 = scmp.lt.s32.totalorder (!%p341_p9), %s5675_s21, 1  ;;  %vm5591_vm0 = vmmov (!%p341_p9), 0   ;;  %v4933_v5 = vld [vmem:[%s7136_s1 + $0x2c] sm:$0xff] (!%p341_p9)  }
   0xf   : > { %344 = sbr.rel (%p341_p9) target bundleno = 1719 (0x6b7), region = 64  ;;  %4815 = vmatprep.subr.bf16.mxu0 (!%p341_p9), %v5590_v1  ;;  %4827 = vmatprep.subr.bf16.mxu1 (!%p341_p9), %v5590_v1  ;;  %v4930_v2 = vld [vmem:[%s7136_s1] sm:$0xff] (!%p341_p9)   ;;  %v4932_v4 = vld [vmem:[%s7136_s1 + $0x8] sm:$0xff] (!%p341_p9)   ;;  %v4934_v6 = vld [vmem:[%s7136_s1 + $0x10] sm:$0xff] (!%p341_p9)   ;;  %vm439_vm1 = vcmask (!%p341_p9), 1040384   ;;  %vm435_vm2 = vcmask (!%p341_p9), 408576  }
  0x10   : > { %4816 = vmatpush3.bf16.msra.mxu0 (!%p341_p9), %v4929_v0  ;;  %4828 = vmatpush3.bf16.msra.mxu1 (!%p341_p9), %v4930_v2  ;;  %v4935_v7 = vld [vmem:[%s7136_s1 + $0x34] ss:$0 sps:$4 sm:$0x11] (!%p341_p9)   ;;  %v4936_v8 = vld [vmem:[%s7136_s1 + $0x18] ss:$0 sps:$4 sm:$0x11] (!%p341_p9)  }
  0x11   : > { %4817 = vmatprep.subr.bf16.mxu0 (!%p341_p9), %v5590_v1  ;;  %4829 = vmatprep.subr.bf16.mxu1 (!%p341_p9), %v5590_v1  ;;  %v441_v10 = vsel (!%p341_p9), %vm439_vm1, %v4935_v7, 0  ;;  %v508_v13 = vsel (!%p341_p9), %vm439_vm1, %v4936_v8, 0  ;;  %v4938_v14 = vld [vmem:[%s7136_s1 + $0x38] sm:$0xff] (!%p341_p9)   ;;  %v4939_v17 = vld [vmem:[%s7136_s1 + $0x40] sm:$0xff] (!%p341_p9)   ;;  %v4940_v18 = vld [vmem:[%s7136_s1 + $0x48] sm:$0xff] (!%p341_p9)   ;;  %v5592_v38 = vmov (!%p341_p9), 0  }
  0x12   : > { %4823 = vmatprep.mubr.msk.bf16.mxu0 (!%p341_p9), %vm5591_vm0, %v5590_v1  ;;  %4835 = vmatprep.mubr.msk.bf16.mxu1 (!%p341_p9), %vm5591_vm0, %v5590_v1  ;;  %v4941_v19 = vld [vmem:[%s7136_s1 + $0x50] ss:$0 sps:$4 sm:$0x11] (!%p341_p9)   ;;  %v4944_v22 = vld [vmem:[%s7138_s3 + $0x84] ss:$8 sps:$4 sm:$0xff] (!%p341_p9)   ;;  %vm2746_vm3 = vcmask (!%p341_p9), 1041408  }
  0x13   : > { %v585_v20 = vsel (!%p341_p9), %vm439_vm1, %v4941_v19, 0  ;;  %v4942_v23 = vld [vmem:[%s7138_s3 + $0x80] ss:$8 sps:$4 sm:$0xff] (!%p341_p9)   ;;  %v4947_v24 = vld [vmem:[%s7138_s3 + $0x94] ss:$8 sps:$4 sm:$0xff] (!%p341_p9)   ;;  %s377_s13 = sand.u32 (!%p341_p9), 1, %s5580_s18  }
  0x14   : > { %4818 = vmatpush3.bf16.msra.mxu0 (!%p341_p9), %v4931_v3  ;;  %4830 = vmatpush3.bf16.msra.mxu1 (!%p341_p9), %v4932_v4  ;;  %v4945_v25 = vld [vmem:[%s7138_s3 + $0x90] ss:$8 sps:$4 sm:$0xff] (!%p341_p9)   ;;  %v4950_v26 = vld [vmem:[%s7138_s3 + $0xa4] ss:$8 sps:$4 sm:$0xff] (!%p341_p9)   ;;  %v4948_v27 = vld [vmem:[%s7138_s3 + $0xa0] ss:$8 sps:$4 sm:$0xff] (!%p341_p9)  }
  0x15   : > { %4819 = vmatprep.subr.bf16.mxu0 (!%p341_p9), %v5590_v1  ;;  %4831 = vmatprep.subr.bf16.mxu1 (!%p341_p9), %v5590_v1  ;;  %v4953_v28 = vld [vmem:[%s7138_s3 + $0xb4] ss:$8 sps:$4 sm:$0xff] (!%p341_p9)   ;;  %v4951_v29 = vld [vmem:[%s7138_s3 + $0xb0] ss:$8 sps:$4 sm:$0xff] (!%p341_p9)   ;;  %v4956_v30 = vld [vmem:[%s7138_s3 + $0xc4] ss:$8 sps:$4 sm:$0xff] (!%p341_p9)  }
  0x16   : > { %s380_s29 = scalar_select %p379_p10, %s5675_s21, 1  ;;  %v4954_v31 = vld [vmem:[%s7138_s3 + $0xc0] ss:$8 sps:$4 sm:$0xff]   ;;  %v4959_v32 = vld [vmem:[%s7138_s3 + $0xd4] ss:$8 sps:$4 sm:$0xff]  }
  0x17   : > { %v4957_v33 = vld [vmem:[%s7138_s3 + $0xd0] ss:$8 sps:$4 sm:$0xff]   ;;  %v4962_v34 = vld [vmem:[%s7138_s3 + $0xe4] ss:$8 sps:$4 sm:$0xff]   ;;  %v4960_v35 = vld [vmem:[%s7138_s3 + $0xe0] ss:$8 sps:$4 sm:$0xff]  }
  0x18   : > { %s4755_s22 = sshll.u32 %s380_s29, 3  ;;  %4820 = vmatpush3.bf16.msra.mxu0 %v4933_v5  ;;  %4832 = vmatpush3.bf16.msra.mxu1 %v4934_v6  ;;  %v4965_v36 = vld [vmem:[%s7138_s3 + $0xf4] ss:$8 sps:$4 sm:$0xff]   ;;  %v4963_v37 = vld [vmem:[%s7138_s3 + $0xf0] ss:$8 sps:$4 sm:$0xff]   ;;  %s4752_s16 = sshll.u32 %s5675_s21, 4 }
  0x19   : > { %s383_s26 = scalar_lea.vmem %s7135_s0, %s4755_s22  ;;  %4821 = vmatprep.subr.bf16.mxu0 %v5590_v1  ;;  %4833 = vmatprep.subr.bf16.mxu1 %v5590_v1  ;;  %v4968_v39 = vld [vmem:[%s7138_s3 + $0x4] ss:$8 sps:$4 sm:$0xff]   ;;  %v5014_v40 = vld [vmem:[%s7140_s5 + $0x200] ss:$16 sps:$4 sm:$0xff]   ;;  %s378_s22 = scalar_lea.vmem [#allocation2], %s377_s13 }
  0x1a   : > { %v4937_v9 = vld [vmem:[%s383_s26] sm:$0xff]   ;;  %s4101_s24 = sshll.u32 %s378_s22, 4  ;;  %s7093_s12 = scalar_lea.hbm %s7146_s11, %s4752_s16  ;;  %s7095_s24 = int_to_ptr.vmem [resolvable:$true] %s4101_s24 }
  0x1b   : > { %v408_v11 = vshrl.u32 %v4937_v9, 16  ;;  %v410_v12 = vshll.u32 %v4937_v9, 16  ;;  %v559_v21 = vrot.slane %v4937_v9, 1  ;;  %v5016_v41 = vld [vmem:[%s7140_s5 + $0x204] ss:$16 sps:$4 sm:$0xff]   ;;  %s4089_s26 = scalar_lea.sflag [#allocation3], %s377_s13 }
  0x1c   : > { %4822 = vmatpush3.bf16.msra.mxu0 %v441_v10  ;;  %4834 = vmatpush3.bf16.msra.mxu1 %v508_v13  ;;  %v5019_v42 = vld [vmem:[%s7140_s5 + $0x224] ss:$16 sps:$4 sm:$0xff]   ;;  %v5017_v43 = vld [vmem:[%s7140_s5 + $0x220] ss:$16 sps:$4 sm:$0xff]   ;;  %s5526_s21 = scalar_lea.vmem %s7095_s24, 16  ;;  %s5593_s29 = smov [#allocation2]  }
  0x1d   : > { %v412_v15 = vrot.slane %v410_v12, 1  ;;  %4839 = vmatprep.subr.bf16.mxu0 %v5590_v1  ;;  %773 = vmatprep.subr.bf16.mxu1 %v4944_v22  ;;  %v5022_v44 = vld [vmem:[%s7140_s5 + $0x244] ss:$16 sps:$4 sm:$0xff]   ;;  %v5020_v45 = vld [vmem:[%s7140_s5 + $0x240] ss:$16 sps:$4 sm:$0xff]   ;;  %p5527_p11 = scmp.ne.s32.totalorder %s7095_s24, %s5526_s21  ;;  %s5530_s14 = sshll.u32 %s5593_s29, 4  ;;  %s5531_s14 = int_to_ptr.vmem [resolvable:$false] %s5530_s14 }
  0x1e   : > { %v5025_v46 = vld [vmem:[%s7140_s5 + $0x264] ss:$16 sps:$4 sm:$0xff]   ;;  %v5023_v47 = vld [vmem:[%s7140_s5 + $0x260] ss:$16 sps:$4 sm:$0xff]   ;;  %s5532_s15 = scalar_lea.vmem %s5531_s14, 32  ;;  %p5533_p0 = scmp.lt.s32.totalorder %s7095_s24, %s5531_s14 }
  0x1f   : > { %v413_v16 = vor.u32 %v412_v15, %v408_v11  ;;  %4836 = vmatmul.mubr.msk.bf16.vlgmr.msra.gmra.mrb[0].mxu1 %vm435_vm2, %v4937_v9  ;;  %v5028_v48 = vld [vmem:[%s7140_s5 + $0x284] ss:$16 sps:$4 sm:$0xff]   ;;  %v5026_v49 = vld [vmem:[%s7140_s5 + $0x280] ss:$16 sps:$4 sm:$0xff]   ;;  %p5528_p12 = pnand %p5527_p11, %p5692_p5  ;;  %p5534_p1 = scmp.lt.s32.totalorder %s5532_s15, %s5526_s21 }
  0x20   : > { %774 = vmatpush1.bf16.msra.mxu1 %v4942_v23  ;;  %805 = vmatprep.mubr.bf16.mxu1 %v5592_v38  ;;  %v5031_v50 = vld [vmem:[%s7140_s5 + $0x2a4] ss:$16 sps:$4 sm:$0xff]   ;;  %v5029_v51 = vld [vmem:[%s7140_s5 + $0x2a0] ss:$16 sps:$4 sm:$0xff]  }
  0x21   : > { %4824 = vmatmul.mubr.msk.bf16.vlgmr.msra.gmra.mrb[0].mxu0 %vm435_vm2, %v413_v16  ;;  %775 = vmatprep.subr.bf16.mxu1 %v4947_v24  ;;  %v5034_v52 = vld [vmem:[%s7140_s5 + $0x2c4] ss:$16 sps:$4 sm:$0xff]   ;;  %v5032_v53 = vld [vmem:[%s7140_s5 + $0x2c0] ss:$16 sps:$4 sm:$0xff]   ;;  %p5529_p13 = pneg %p5528_p12  ;;  %p5535_p2 = por %p5534_p1, %p5533_p0 }
  0x22   : > { %4840 = vmatpush3.bf16.msra.mxu0 %v4938_v14  ;;  %4847 = vmatprep.mubr.msk.bf16.mxu0 %vm5591_vm0, %v5590_v1  ;;  %v5037_v54 = vld [vmem:[%s7140_s5 + $0x2e4] ss:$16 sps:$4 sm:$0xff]   ;;  %v5035_v56 = vld [vmem:[%s7140_s5 + $0x2e0] ss:$16 sps:$4 sm:$0xff]  }
  0x23   : > { %4841 = vmatprep.subr.bf16.mxu0 %v5590_v1  ;;  %v5040_v59 = vld [vmem:[%s7140_s5 + $0x304] ss:$16 sps:$4 sm:$0xff]   ;;  %v5038_v4 = vld [vmem:[%s7140_s5 + $0x300] ss:$16 sps:$4 sm:$0xff]   ;;  %p5536_p3 = pnand %p5535_p2, %p5529_p13 }
  0x24   : > { %776 = vmatpush1.bf16.msra.mxu1 %v4945_v25  ;;  %v5043_v5 = vld [vmem:[%s7140_s5 + $0x324] ss:$16 sps:$4 sm:$0xff]   ;;  %v5041_v7 = vld [vmem:[%s7140_s5 + $0x320] ss:$16 sps:$4 sm:$0xff]  }
  0x25   : > { %777 = vmatprep.subr.bf16.mxu1 %v4950_v26  ;;  %v5046_v8 = vld [vmem:[%s7140_s5 + $0x344] ss:$16 sps:$4 sm:$0xff]   ;;  %v630_v10 = vld [vmem:[%s7137_s2] sm:$0x7] }
  0x26   : > { %4842 = vmatpush3.bf16.msra.mxu0 %v4939_v17  ;;  %v5044_v11 = vld [vmem:[%s7140_s5 + $0x340] ss:$16 sps:$4 sm:$0xff]  }
  0x27   : > { %4843 = vmatprep.subr.bf16.mxu0 %v5590_v1 }
  0x28   : > { %778 = vmatpush1.bf16.msra.mxu1 %v4948_v27 }
  0x29   : > { %779 = vmatprep.subr.bf16.mxu1 %v4953_v28 }
  0x2a   : > { %4844 = vmatpush3.bf16.msra.mxu0 %v4940_v18 }
  0x2b   : > { %4845 = vmatprep.subr.bf16.mxu0 %v5590_v1  ;;  %v631_v1 = vlaneseq }
  0x2c   : > { %780 = vmatpush1.bf16.msra.mxu1 %v4951_v29 }
  0x2d   : > { %781 = vmatprep.subr.bf16.mxu1 %v4956_v30  ;;  %v5861_v6 = vshrl.u32 %v631_v1, 7  ;;  %v5013_v1 = vld [vmem:[%s7138_s3 + $0x174] ss:$8 sps:$4 sm:$0xff]  }
  0x2e   : > { %4846 = vmatpush3.bf16.msra.mxu0 %v585_v20 }
  0x2f   : > { %1625 = vmatprep.subr.bf16.mxu0 %v5016_v41  ;;  %v5870_v9 = vsub.s32 0, %v5861_v6  ;;  %v5880_v13 = vsub.s32 1, %v5861_v6  ;;  %v5884_v20 = vsub.s32 2, %v5861_v6  ;;  %v4972_v41 = vld [vmem:[%s7138_s3 + $0x20] ss:$8 sps:$4 sm:$0xff]  }
  0x30   : > { %782 = vmatpush1.bf16.msra.mxu1 %v4954_v31 }
  0x31   : > { %4848 = vmatmul.mubr.msk.bf16.vlgmr.msra.gmra.mrb[4].mxu0 %vm435_vm2, %v559_v21  ;;  %783 = vmatprep.subr.bf16.mxu1 %v4959_v32  ;;  %v634_v12 = vrot.slane %v630_v10, %v5870_v9  ;;  %v642_v19 = vrot.slane %v630_v10, %v5880_v13  ;;  %v648_v26 = vrot.slane %v630_v10, %v5884_v20  ;;  %v5055_v10 = vld [vmem:[%s7140_s5 + $0x3a4] ss:$16 sps:$4 sm:$0xff]  }
  0x32   : > { %1626 = vmatpush1.bf16.msra.mxu0 %v5014_v40  ;;  %v4974_v40 = vld [vmem:[%s7138_s3 + $0x24] ss:$8 sps:$4 sm:$0xff]  }
  0x33   : > { %1627 = vmatprep.subr.bf16.mxu0 %v5019_v42  ;;  %v4977_v42 = vld [vmem:[%s7138_s3 + $0x34] ss:$8 sps:$4 sm:$0xff]  }
  0x34   : > { %784 = vmatpush1.bf16.msra.mxu1 %v4957_v33 }
  0x35   : > { %785 = vmatprep.subr.bf16.mxu1 %v4962_v34 }
  0x36   : > { %1628 = vmatpush1.bf16.msra.mxu0 %v5017_v43  ;;  %v4975_v43 = vld [vmem:[%s7138_s3 + $0x30] ss:$8 sps:$4 sm:$0xff]  }
  0x37   : > { %1629 = vmatprep.subr.bf16.mxu0 %v5022_v44  ;;  %v4980_v44 = vld [vmem:[%s7138_s3 + $0x44] ss:$8 sps:$4 sm:$0xff]  }
  0x38   : > { %786 = vmatpush1.bf16.msra.mxu1 %v4960_v35  ;;  %v4966_v35 = vld [vmem:[%s7138_s3] ss:$8 sps:$4 sm:$0xff]  }
  0x39   : > { %787 = vmatprep.subr.bf16.mxu1 %v4965_v36 }
  0x3a   : > { %1630 = vmatpush1.bf16.msra.mxu0 %v5020_v45  ;;  %v4978_v45 = vld [vmem:[%s7138_s3 + $0x40] ss:$8 sps:$4 sm:$0xff]  }
  0x3b   : > { %1631 = vmatprep.subr.bf16.mxu0 %v5025_v46  ;;  %v4983_v46 = vld [vmem:[%s7138_s3 + $0x54] ss:$8 sps:$4 sm:$0xff]  }
  0x3c   : > { %788 = vmatpush1.bf16.msra.mxu1 %v4963_v37  ;;  %v4971_v37 = vld [vmem:[%s7138_s3 + $0x14] ss:$8 sps:$4 sm:$0xff]  }
  0x3d   : > { %896 = vmatprep.subr.bf16.mxu1 %v4968_v39  ;;  %v4969_v39 = vld [vmem:[%s7138_s3 + $0x10] ss:$8 sps:$4 sm:$0xff]  }
  0x3e   : > { %1632 = vmatpush1.bf16.msra.mxu0 %v5023_v47  ;;  %v4981_v47 = vld [vmem:[%s7138_s3 + $0x50] ss:$8 sps:$4 sm:$0xff]  }
  0x3f   : > { %1633 = vmatprep.subr.bf16.mxu0 %v5028_v48  ;;  %v4986_v48 = vld [vmem:[%s7138_s3 + $0x64] ss:$8 sps:$4 sm:$0xff]  }
  0x42   : > { %1634 = vmatpush1.bf16.msra.mxu0 %v5026_v49  ;;  %v4984_v49 = vld [vmem:[%s7138_s3 + $0x60] ss:$8 sps:$4 sm:$0xff]  }
  0x43   : > { %1635 = vmatprep.subr.bf16.mxu0 %v5031_v50  ;;  %v4989_v50 = vld [vmem:[%s7138_s3 + $0x74] ss:$8 sps:$4 sm:$0xff]  }
  0x46   : > { %1636 = vmatpush1.bf16.msra.mxu0 %v5029_v51  ;;  %v4987_v51 = vld [vmem:[%s7138_s3 + $0x70] ss:$8 sps:$4 sm:$0xff]  }
  0x47   : > { %1637 = vmatprep.subr.bf16.mxu0 %v5034_v52  ;;  %v4992_v52 = vld [vmem:[%s7138_s3 + $0x104] ss:$8 sps:$4 sm:$0xff]  }
  0x4a   : > { %1638 = vmatpush1.bf16.msra.mxu0 %v5032_v53  ;;  %v4990_v53 = vld [vmem:[%s7138_s3 + $0x100] ss:$8 sps:$4 sm:$0xff]  }
  0x4b   : > { %1639 = vmatprep.subr.bf16.mxu0 %v5037_v54  ;;  %v4995_v54 = vld [vmem:[%s7138_s3 + $0x114] ss:$8 sps:$4 sm:$0xff]  }
  0x4e   : > { %1640 = vmatpush1.bf16.msra.mxu0 %v5035_v56  ;;  %v4998_v56 = vld [vmem:[%s7138_s3 + $0x124] ss:$8 sps:$4 sm:$0xff]  }
  0x4f   : > { %1641 = vmatprep.subr.bf16.mxu0 %v5040_v59  ;;  %v5004_v59 = vld [vmem:[%s7138_s3 + $0x144] ss:$8 sps:$4 sm:$0xff]  }
  0x52   : > { %1642 = vmatpush1.bf16.msra.mxu0 %v5038_v4  ;;  %v5049_v4 = vld [vmem:[%s7140_s5 + $0x364] ss:$16 sps:$4 sm:$0xff]  }
  0x53   : > { %1643 = vmatprep.subr.bf16.mxu0 %v5043_v5  ;;  %v5047_v5 = vld [vmem:[%s7140_s5 + $0x360] ss:$16 sps:$4 sm:$0xff]  }
  0x56   : > { %1644 = vmatpush1.bf16.msra.mxu0 %v5041_v7  ;;  %v5052_v7 = vld [vmem:[%s7140_s5 + $0x384] ss:$16 sps:$4 sm:$0xff]  }
  0x57   : > { %1645 = vmatprep.subr.bf16.mxu0 %v5046_v8  ;;  %v5050_v8 = vld [vmem:[%s7140_s5 + $0x380] ss:$16 sps:$4 sm:$0xff]  }
  0x5a   : > { %1646 = vmatpush1.bf16.msra.mxu0 %v5044_v11  ;;  %v5053_v11 = vld [vmem:[%s7140_s5 + $0x3a0] ss:$16 sps:$4 sm:$0xff]  }
  0x5b   : > { %1647 = vmatprep.subr.bf16.mxu0 %v5049_v4  ;;  %v5070_v4 = vld [vmem:[%s7140_s5 + $0x24c] ss:$16 sps:$4 sm:$0xff]  }
  0x5e   : > { %1648 = vmatpush1.bf16.msra.mxu0 %v5047_v5  ;;  %v5068_v5 = vld [vmem:[%s7140_s5 + $0x248] ss:$16 sps:$4 sm:$0xff]  }
  0x5f   : > { %1649 = vmatprep.subr.bf16.mxu0 %v5052_v7  ;;  %v5073_v7 = vld [vmem:[%s7140_s5 + $0x26c] ss:$16 sps:$4 sm:$0xff]  }
  0x62   : > { %1650 = vmatpush1.bf16.msra.mxu0 %v5050_v8  ;;  %v5071_v8 = vld [vmem:[%s7140_s5 + $0x268] ss:$16 sps:$4 sm:$0xff]  }
  0x63   : > { %1651 = vmatprep.subr.bf16.mxu0 %v5055_v10  ;;  %v5076_v10 = vld [vmem:[%s7140_s5 + $0x28c] ss:$16 sps:$4 sm:$0xff]  }
  0x66   : > { %1652 = vmatpush1.bf16.msra.mxu0 %v5053_v11  ;;  %v5074_v11 = vld [vmem:[%s7140_s5 + $0x288] ss:$16 sps:$4 sm:$0xff]  }
  0xf2   : > { %v544_v57 = vpop.f32.mrb[0].mxu1 }
  0xf3   : > { %v4837_v61 = vpop.f32.mrb[1].mxu1 }
  0xf4   : > { %v477_v55 = vpop.f32.mrb[0].mxu0  ;;  %v547_v63 = vpop.f32.mrb[2].mxu1  ;;  %v5007_v61 = vld [vmem:[%s7138_s3 + $0x154] ss:$8 sps:$4 sm:$0xff]  }
  0xf5   : > { %v4825_v58 = vpop.f32.mrb[1].mxu0  ;;  %v545_v60 = vadd.f32 %v544_v57, %v477_v55  ;;  %v4838_v3 = vpop.f32.mrb[3].mxu1  ;;  %v4993_v55 = vld [vmem:[%s7138_s3 + $0x110] ss:$8 sps:$4 sm:$0xff]   ;;  %v4996_v57 = vld [vmem:[%s7138_s3 + $0x120] ss:$8 sps:$4 sm:$0xff]  }
  0xf6   : > { %v480_v62 = vpop.f32.mrb[2].mxu0  ;;  %v5001_v58 = vld [vmem:[%s7138_s3 + $0x134] ss:$8 sps:$4 sm:$0xff]  }
  0xf7   : > { %v4826_v0 = vpop.f32.mrb[3].mxu0  ;;  %v548_v2 = vadd.f32 %v547_v63, %v480_v62  ;;  %v5005_v62 = vld [vmem:[%s7138_s3 + $0x150] ss:$8 sps:$4 sm:$0xff]   ;;  %v5010_v63 = vld [vmem:[%s7138_s3 + $0x164] ss:$8 sps:$4 sm:$0xff]  }
  0xf8   : > { %v5008_v0 = vld [vmem:[%s7138_s3 + $0x160] ss:$8 sps:$4 sm:$0xff]  }
 0x104   : > { %v621_v14 = vpop.f32.mrb[4].mxu0 }
 0x105   : > { %v628_v15 = vadd.f32 %v621_v14, %v545_v60  ;;  %v4849_v16 = vpop.f32.mrb[5].mxu0  ;;  %v5002_v60 = vld [vmem:[%s7138_s3 + $0x140] ss:$8 sps:$4 sm:$0xff]  }
 0x106   : > { %v624_v17 = vpop.f32.mrb[6].mxu0  ;;  %v5056_v14 = vld [vmem:[%s7140_s5 + $0x3c0] ss:$16 sps:$4 sm:$0xff]  }
 0x107   : > { %v635_v18 = vadd.f32 %v634_v12, %v628_v15  ;;  %v629_v21 = vadd.f32 %v624_v17, %v548_v2  ;;  %v4850_v22 = vpop.f32.mrb[7].mxu0  ;;  %v5011_v2 = vld [vmem:[%s7138_s3 + $0x170] ss:$8 sps:$4 sm:$0xff]   ;;  %v5061_v15 = vld [vmem:[%s7140_s5 + $0x3e4] ss:$16 sps:$4 sm:$0xff]  }
 0x108   : > { %v5059_v16 = vld [vmem:[%s7140_s5 + $0x3e0] ss:$16 sps:$4 sm:$0xff]   ;;  %v5064_v17 = vld [vmem:[%s7140_s5 + $0x20c] ss:$16 sps:$4 sm:$0xff]  }
 0x109   : > { %v637_v23 = vmax.f32 %v635_v18, 0.0  ;;  %v636_v24 = vadd.f32 %v634_v12, %v629_v21  ;;  %v5058_v12 = vld [vmem:[%s7140_s5 + $0x3c4] ss:$16 sps:$4 sm:$0xff]  }
 0x10a   : > { %1653 = vmatprep.subr.bf16.mxu0 %v5058_v12  ;;  %v1086_v18 = vld [vmem:[%s7139_s4] sm:$0x77]  ;;  %v5079_v12 = vld [vmem:[%s7140_s5 + $0x2ac] ss:$16 sps:$4 sm:$0xff]  }
 0x10b   : > { %v643_v25 = vmul.f32 %v642_v19, %v637_v23  ;;  %v638_v27 = vmax.f32 %v636_v24, 0.0  ;;  %1654 = vmatpush1.bf16.msra.mxu0 %v5056_v14  ;;  %v1091_v21 = vrot.slane %v1086_v18, %v5870_v9  ;;  %v6030_v23 = vsub.s32 5, %v5861_v6  ;;  %v5077_v14 = vld [vmem:[%s7140_s5 + $0x2a8] ss:$16 sps:$4 sm:$0xff]  }
 0x10c   : > { %1655 = vmatprep.subr.bf16.mxu0 %v5061_v15  ;;  %v5082_v15 = vld [vmem:[%s7140_s5 + $0x2cc] ss:$16 sps:$4 sm:$0xff]  }
 0x10d   : > { %v644_v28 = vmul.f32 %v642_v19, %v638_v27  ;;  %v649_v29 = vadd.f32 %v648_v26, %v643_v25  ;;  %v6025_v19 = vsub.s32 4, %v5861_v6  ;;  %v1101_v24 = vrot.slane %v1091_v21, %v5870_v9  ;;  %v5088_v21 = vld [vmem:[%s7140_s5 + $0x30c] ss:$16 sps:$4 sm:$0xff]  }
 0x10e   : > { %v1117_v25 = vrot.slane %v1086_v18, %v5880_v13  ;;  %v1121_v27 = vrot.slane %v1086_v18, %v6030_v23 }
 0x10f   : > { %v650_v30 = vadd.f32 %v648_v26, %v644_v28  ;;  %1656 = vmatpush1.bf16.msra.mxu0 %v5059_v16  ;;  %v1095_v22 = vrot.slane %v1086_v18, %v6025_v19  ;;  %v6037_v28 = vsub.s32 6, %v5861_v6  ;;  %v5080_v16 = vld [vmem:[%s7140_s5 + $0x2c8] ss:$16 sps:$4 sm:$0xff]  }
 0x110   : > { %1668 = vmatprep.subr.bf16.mxu0 %v5064_v17  ;;  %v5085_v17 = vld [vmem:[%s7140_s5 + $0x2ec] ss:$16 sps:$4 sm:$0xff]  }
 0x111   : > { %v5887_v31 = vpack.c.bf16 %v650_v30, %v649_v29  ;;  %v1105_v26 = vrot.slane %v1095_v22, %v5870_v9  ;;  %v5086_v22 = vld [vmem:[%s7140_s5 + $0x308] ss:$16 sps:$4 sm:$0xff]  }
 0x113   : > { %v688_v32 = vshll.u32 %v5887_v31, 16  ;;  %v686_v33 = vshrl.u32 %v5887_v31, 16  ;;  %v957_v3 = vrot.slane %v5887_v31, 1 }
 0x115   : > { %v690_v34 = vrot.slane %v688_v32, 1  ;;  %v1139_v32 = vrot.slane %v1086_v18, %v5884_v20 }
 0x117   : > { %v691_v36 = vor.u32 %v690_v34, %v686_v33 }
 0x119   : > { %806 = vmatmul.mubr.bf16.vlgmr.msra.gmra.mrb[4].mxu1 %v691_v36  ;;  %v1143_v36 = vrot.slane %v1086_v18, %v6037_v28  ;;  %v5083_v18 = vld [vmem:[%s7140_s5 + $0x2e8] ss:$16 sps:$4 sm:$0xff]  }
 0x11a   : > { %897 = vmatpush1.bf16.msra.mxu1 %v4966_v35  ;;  %928 = vmatprep.mubr.bf16.mxu1 %v5592_v38  ;;  %v1131_v35 = vrot.slane %v1121_v27, %v5880_v13  ;;  %v5092_v27 = vld [vmem:[%s7140_s5 + $0x348] ss:$16 sps:$4 sm:$0xff]  }
 0x11b   : > { %898 = vmatprep.subr.bf16.mxu1 %v4971_v37 }
 0x11e   : > { %899 = vmatpush1.bf16.msra.mxu1 %v4969_v39 }
 0x11f   : > { %900 = vmatprep.subr.bf16.mxu1 %v4974_v40 }
 0x122   : > { %901 = vmatpush1.bf16.msra.mxu1 %v4972_v41 }
 0x123   : > { %902 = vmatprep.subr.bf16.mxu1 %v4977_v42 }
 0x126   : > { %903 = vmatpush1.bf16.msra.mxu1 %v4975_v43 }
 0x127   : > { %904 = vmatprep.subr.bf16.mxu1 %v4980_v44 }
 0x12a   : > { %905 = vmatpush1.bf16.msra.mxu1 %v4978_v45  ;;  %v1149_v45 = vrot.slane %v1139_v32, %v5884_v20  ;;  %v5098_v32 = vld [vmem:[%s7140_s5 + $0x388] ss:$16 sps:$4 sm:$0xff]  }
 0x12b   : > { %906 = vmatprep.subr.bf16.mxu1 %v4983_v46 }
 0x12e   : > { %907 = vmatpush1.bf16.msra.mxu1 %v4981_v47 }
 0x12f   : > { %908 = vmatprep.subr.bf16.mxu1 %v4986_v48  ;;  %v1153_v48 = vrot.slane %v1143_v36, %v5884_v20  ;;  %v5104_v36 = vld [vmem:[%s7140_s5 + $0x3c8] ss:$16 sps:$4 sm:$0xff]  }
 0x132   : > { %909 = vmatpush1.bf16.msra.mxu1 %v4984_v49 }
 0x133   : > { %910 = vmatprep.subr.bf16.mxu1 %v4989_v50 }
 0x136   : > { %911 = vmatpush1.bf16.msra.mxu1 %v4987_v51 }
 0x137   : > { %1039 = vmatprep.subr.bf16.mxu1 %v4992_v52 }
 0x139   : > { %929 = vmatmul.mubr.bf16.vlgmr.msra.gmra.mrb[4].mxu1 %v5887_v31  ;;  %v1127_v31 = vrot.slane %v1117_v25, %v5880_v13  ;;  %v5089_v25 = vld [vmem:[%s7140_s5 + $0x328] ss:$16 sps:$4 sm:$0xff]  }
 0x13a   : > { %1040 = vmatpush1.bf16.msra.mxu1 %v4990_v53  ;;  %1071 = vmatprep.mubr.bf16.mxu1 %v5592_v38  ;;  %v4999_v38 = vld [vmem:[%s7138_s3 + $0x130] ss:$8 sps:$4 sm:$0xff]  }
 0x13b   : > { %1041 = vmatprep.subr.bf16.mxu1 %v4995_v54 }
 0x13e   : > { %1042 = vmatpush1.bf16.msra.mxu1 %v4993_v55 }
 0x13f   : > { %1043 = vmatprep.subr.bf16.mxu1 %v4998_v56 }
 0x142   : > { %1044 = vmatpush1.bf16.msra.mxu1 %v4996_v57 }
 0x143   : > { %1045 = vmatprep.subr.bf16.mxu1 %v5001_v58 }
 0x146   : > { %1046 = vmatpush1.bf16.msra.mxu1 %v4999_v38 }
 0x147   : > { %1047 = vmatprep.subr.bf16.mxu1 %v5004_v59 }
 0x14a   : > { %1048 = vmatpush1.bf16.msra.mxu1 %v5002_v60 }
 0x14b   : > { %1049 = vmatprep.subr.bf16.mxu1 %v5007_v61 }
 0x14e   : > { %1050 = vmatpush1.bf16.msra.mxu1 %v5005_v62 }
 0x14f   : > { %1051 = vmatprep.subr.bf16.mxu1 %v5010_v63 }
 0x152   : > { %1052 = vmatpush1.bf16.msra.mxu1 %v5008_v0  ;;  %v5062_v0 = vld [vmem:[%s7140_s5 + $0x208] ss:$16 sps:$4 sm:$0xff]  }
 0x153   : > { %1053 = vmatprep.subr.bf16.mxu1 %v5013_v1 }
 0x156   : > { %1054 = vmatpush1.bf16.msra.mxu1 %v5011_v2  ;;  %v5067_v2 = vld [vmem:[%s7140_s5 + $0x22c] ss:$16 sps:$4 sm:$0xff]  }
 0x159   : > { %1072 = vmatmul.mubr.bf16.vlgmr.msra.gmra.mrb[4].mxu1 %v957_v3  ;;  %v5065_v3 = vld [vmem:[%s7140_s5 + $0x228] ss:$16 sps:$4 sm:$0xff]  }
 0x22c   : > { %v1073_v29 = vpop.f32.mrb[4].mxu1 }
 0x22d   : > { %v1106_v30 = vadd.f32 %v1101_v24, %v1073_v29  ;;  %v1075_v33 = vpop.f32.mrb[5].mxu1  ;;  %v5097_v29 = vld [vmem:[%s7140_s5 + $0x36c] ss:$16 sps:$4 sm:$0xff]  }
 0x22e   : > { %v1107_v34 = vadd.f32 %v1105_v26, %v1075_v33  ;;  %v1077_v37 = vpop.f32.mrb[6].mxu1  ;;  %v5103_v33 = vld [vmem:[%s7140_s5 + $0x3ac] ss:$16 sps:$4 sm:$0xff]  }
 0x22f   : > { %v1110_v39 = vmax.f32 %v1106_v30, 0.0  ;;  %v1108_v40 = vadd.f32 %v1101_v24, %v1077_v37  ;;  %v1079_v41 = vpop.f32.mrb[7].mxu1  ;;  %v5091_v24 = vld [vmem:[%s7140_s5 + $0x32c] ss:$16 sps:$4 sm:$0xff]   ;;  %v5095_v30 = vld [vmem:[%s7140_s5 + $0x368] ss:$16 sps:$4 sm:$0xff]  }
 0x230   : > { %v1111_v42 = vmax.f32 %v1107_v34, 0.0  ;;  %v1109_v43 = vadd.f32 %v1105_v26, %v1079_v41  ;;  %v5094_v26 = vld [vmem:[%s7140_s5 + $0x34c] ss:$16 sps:$4 sm:$0xff]   ;;  %v5101_v34 = vld [vmem:[%s7140_s5 + $0x3a8] ss:$16 sps:$4 sm:$0xff]  }
 0x231   : > { %v1132_v44 = vmul.f32 %v1127_v31, %v1110_v39  ;;  %v1112_v46 = vmax.f32 %v1108_v40, 0.0  ;;  %v5109_v37 = vld [vmem:[%s7140_s5 + $0x3ec] ss:$16 sps:$4 sm:$0xff]   ;;  %v5107_v39 = vld [vmem:[%s7140_s5 + $0x3e8] ss:$16 sps:$4 sm:$0xff]  }
 0x232   : > { %v1133_v47 = vmul.f32 %v1131_v35, %v1111_v42  ;;  %v1113_v49 = vmax.f32 %v1109_v43, 0.0  ;;  %v5112_v40 = vld [vmem:[%s7140_s5 + $0x4] ss:$16 sps:$4 sm:$0xff]   ;;  %v5110_v41 = vld [vmem:[%s7140_s5] ss:$16 sps:$4 sm:$0xff]  }
 0x233   : > { %v1134_v50 = vmul.f32 %v1127_v31, %v1112_v46  ;;  %v1154_v52 = vadd.f32 %v1149_v45, %v1132_v44  ;;  %v5100_v31 = vld [vmem:[%s7140_s5 + $0x38c] ss:$16 sps:$4 sm:$0xff]   ;;  %v5115_v42 = vld [vmem:[%s7140_s5 + $0x24] ss:$16 sps:$4 sm:$0xff]   ;;  %v5113_v43 = vld [vmem:[%s7140_s5 + $0x20] ss:$16 sps:$4 sm:$0xff]  }
 0x234   : > { %v1135_v51 = vmul.f32 %v1131_v35, %v1113_v49  ;;  %v1155_v54 = vadd.f32 %v1153_v48, %v1133_v47  ;;  %v5106_v35 = vld [vmem:[%s7140_s5 + $0x3cc] ss:$16 sps:$4 sm:$0xff]   ;;  %v5118_v44 = vld [vmem:[%s7140_s5 + $0x44] ss:$16 sps:$4 sm:$0xff]   ;;  %v5119_v47 = vld [vmem:[%s7140_s5 + $0x60] ss:$16 sps:$4 sm:$0xff]  }
 0x235   : > { %v1156_v53 = vadd.f32 %v1149_v45, %v1134_v50  ;;  %v5116_v45 = vld [vmem:[%s7140_s5 + $0x40] ss:$16 sps:$4 sm:$0xff]   ;;  %v5121_v46 = vld [vmem:[%s7140_s5 + $0x64] ss:$16 sps:$4 sm:$0xff]  }
 0x236   : > { %v1157_v55 = vadd.f32 %v1153_v48, %v1135_v51  ;;  %v5124_v48 = vld [vmem:[%s7140_s5 + $0x84] ss:$16 sps:$4 sm:$0xff]   ;;  %v5122_v49 = vld [vmem:[%s7140_s5 + $0x80] ss:$16 sps:$4 sm:$0xff]  }
 0x237   : > { %v6045_v56 = vpack.c.bf16 %v1156_v53, %v1154_v52  ;;  %v5127_v50 = vld [vmem:[%s7140_s5 + $0xa4] ss:$16 sps:$4 sm:$0xff]   ;;  %v5125_v51 = vld [vmem:[%s7140_s5 + $0xa0] ss:$16 sps:$4 sm:$0xff]  }
 0x238   : > { %v6047_v57 = vpack.c.bf16 %v1157_v55, %v1155_v54  ;;  %v5130_v52 = vld [vmem:[%s7140_s5 + $0xc4] ss:$16 sps:$4 sm:$0xff]   ;;  %v5128_v53 = vld [vmem:[%s7140_s5 + $0xc0] ss:$16 sps:$4 sm:$0xff]  }
 0x239   : > { %v1292_v58 = vshll.u32 %v6045_v56, 16  ;;  %v1290_v62 = vshrl.u32 %v6045_v56, 16  ;;  %v5133_v54 = vld [vmem:[%s7140_s5 + $0xe4] ss:$16 sps:$4 sm:$0xff]   ;;  %v5131_v55 = vld [vmem:[%s7140_s5 + $0xe0] ss:$16 sps:$4 sm:$0xff]  }
 0x23a   : > { %v1299_v38 = vshll.u32 %v6047_v57, 16  ;;  %v1297_v60 = vshrl.u32 %v6047_v57, 16 }
 0x23b   : > { %v1294_v59 = vrot.slane %v1292_v58, 1  ;;  %v5136_v58 = vld [vmem:[%s7140_s5 + $0x104] ss:$16 sps:$4 sm:$0xff]  }
 0x23c   : > { %v1301_v61 = vrot.slane %v1299_v38, 1  ;;  %v5134_v38 = vld [vmem:[%s7140_s5 + $0x100] ss:$16 sps:$4 sm:$0xff]  }
 0x23d   : > { %v6056_v1 = vor.u32 %v1294_v59, %v1290_v62  ;;  %v5139_v59 = vld [vmem:[%s7140_s5 + $0x124] ss:$16 sps:$4 sm:$0xff]   ;;  %v5140_v62 = vld [vmem:[%s7140_s5 + $0x140] ss:$16 sps:$4 sm:$0xff]  }
 0x23e   : > { %v1302_v63 = vor.u32 %v1301_v61, %v1297_v60  ;;  %v5137_v60 = vld [vmem:[%s7140_s5 + $0x120] ss:$16 sps:$4 sm:$0xff]   ;;  %v5142_v61 = vld [vmem:[%s7140_s5 + $0x144] ss:$16 sps:$4 sm:$0xff]  }
 0x240   : > { %1657 = vmatprep.mubr.bf16.mxu0 %v1302_v63 }
 0x241   : > { %1658 = vmatmul.mubr.bf16.vlgmr.msra.gmra.mrb[8].mxu0 %v6056_v1 }
 0x242   : > { %1669 = vmatpush1.bf16.msra.mxu0 %v5062_v0  ;;  %1700 = vmatprep.mubr.bf16.mxu0 %v1302_v63  ;;  %v5145_v63 = vld [vmem:[%s7140_s5 + $0x164] ss:$16 sps:$4 sm:$0xff]   ;;  %v5143_v0 = vld [vmem:[%s7140_s5 + $0x160] ss:$16 sps:$4 sm:$0xff]  }
 0x243   : > { %1670 = vmatprep.subr.bf16.mxu0 %v5067_v2  ;;  %v5146_v2 = vld [vmem:[%s7140_s5 + $0x180] ss:$16 sps:$4 sm:$0xff]  }
 0x246   : > { %1671 = vmatpush1.bf16.msra.mxu0 %v5065_v3  ;;  %v5151_v3 = vld [vmem:[%s7140_s5 + $0x1a4] ss:$16 sps:$4 sm:$0xff]  }
 0x247   : > { %1672 = vmatprep.subr.bf16.mxu0 %v5070_v4  ;;  %v5149_v4 = vld [vmem:[%s7140_s5 + $0x1a0] ss:$16 sps:$4 sm:$0xff]  }
 0x24a   : > { %1673 = vmatpush1.bf16.msra.mxu0 %v5068_v5  ;;  %v5154_v5 = vld [vmem:[%s7140_s5 + $0x1c4] ss:$16 sps:$4 sm:$0xff]  }
 0x24b   : > { %1674 = vmatprep.subr.bf16.mxu0 %v5073_v7  ;;  %v5152_v7 = vld [vmem:[%s7140_s5 + $0x1c0] ss:$16 sps:$4 sm:$0xff]  }
 0x24e   : > { %1675 = vmatpush1.bf16.msra.mxu0 %v5071_v8  ;;  %v5157_v8 = vld [vmem:[%s7140_s5 + $0x1e4] ss:$16 sps:$4 sm:$0xff]  }
 0x24f   : > { %1676 = vmatprep.subr.bf16.mxu0 %v5076_v10  ;;  %v5155_v10 = vld [vmem:[%s7140_s5 + $0x1e0] ss:$16 sps:$4 sm:$0xff]  }
 0x252   : > { %1677 = vmatpush1.bf16.msra.mxu0 %v5074_v11  ;;  %v5160_v11 = vld [vmem:[%s7140_s5 + $0xc] ss:$16 sps:$4 sm:$0xff]  }
 0x253   : > { %1678 = vmatprep.subr.bf16.mxu0 %v5079_v12  ;;  %v5158_v12 = vld [vmem:[%s7140_s5 + $0x8] ss:$16 sps:$4 sm:$0xff]  }
 0x256   : > { %1679 = vmatpush1.bf16.msra.mxu0 %v5077_v14  ;;  %v5163_v14 = vld [vmem:[%s7140_s5 + $0x2c] ss:$16 sps:$4 sm:$0xff]  }
 0x257   : > { %1680 = vmatprep.subr.bf16.mxu0 %v5082_v15  ;;  %v5161_v15 = vld [vmem:[%s7140_s5 + $0x28] ss:$16 sps:$4 sm:$0xff]  }
 0x25a   : > { %1681 = vmatpush1.bf16.msra.mxu0 %v5080_v16  ;;  %v5166_v16 = vld [vmem:[%s7140_s5 + $0x4c] ss:$16 sps:$4 sm:$0xff]  }
 0x25b   : > { %1682 = vmatprep.subr.bf16.mxu0 %v5085_v17  ;;  %v5164_v17 = vld [vmem:[%s7140_s5 + $0x48] ss:$16 sps:$4 sm:$0xff]  }
 0x25e   : > { %1683 = vmatpush1.bf16.msra.mxu0 %v5083_v18  ;;  %v5169_v18 = vld [vmem:[%s7140_s5 + $0x6c] ss:$16 sps:$4 sm:$0xff]  }
 0x25f   : > { %1684 = vmatprep.subr.bf16.mxu0 %v5088_v21  ;;  %v5167_v21 = vld [vmem:[%s7140_s5 + $0x68] ss:$16 sps:$4 sm:$0xff]  }
 0x262   : > { %1685 = vmatpush1.bf16.msra.mxu0 %v5086_v22  ;;  %v5172_v22 = vld [vmem:[%s7140_s5 + $0x8c] ss:$16 sps:$4 sm:$0xff]  }
 0x263   : > { %1686 = vmatprep.subr.bf16.mxu0 %v5091_v24  ;;  %v5170_v24 = vld [vmem:[%s7140_s5 + $0x88] ss:$16 sps:$4 sm:$0xff]  }
 0x266   : > { %1687 = vmatpush1.bf16.msra.mxu0 %v5089_v25  ;;  %v5175_v25 = vld [vmem:[%s7140_s5 + $0xac] ss:$16 sps:$4 sm:$0xff]  }
 0x267   : > { %1688 = vmatprep.subr.bf16.mxu0 %v5094_v26  ;;  %v5173_v26 = vld [vmem:[%s7140_s5 + $0xa8] ss:$16 sps:$4 sm:$0xff]  }
 0x26a   : > { %1689 = vmatpush1.bf16.msra.mxu0 %v5092_v27  ;;  %v5178_v27 = vld [vmem:[%s7140_s5 + $0xcc] ss:$16 sps:$4 sm:$0xff]  }
 0x26b   : > { %1690 = vmatprep.subr.bf16.mxu0 %v5097_v29  ;;  %v5176_v29 = vld [vmem:[%s7140_s5 + $0xc8] ss:$16 sps:$4 sm:$0xff]  }
 0x26e   : > { %1691 = vmatpush1.bf16.msra.mxu0 %v5095_v30  ;;  %v5181_v30 = vld [vmem:[%s7140_s5 + $0xec] ss:$16 sps:$4 sm:$0xff]  }
 0x26f   : > { %1692 = vmatprep.subr.bf16.mxu0 %v5100_v31  ;;  %v5179_v31 = vld [vmem:[%s7140_s5 + $0xe8] ss:$16 sps:$4 sm:$0xff]  }
 0x272   : > { %1693 = vmatpush1.bf16.msra.mxu0 %v5098_v32  ;;  %v5184_v32 = vld [vmem:[%s7140_s5 + $0x10c] ss:$16 sps:$4 sm:$0xff]  }
 0x273   : > { %1694 = vmatprep.subr.bf16.mxu0 %v5103_v33  ;;  %v5182_v33 = vld [vmem:[%s7140_s5 + $0x108] ss:$16 sps:$4 sm:$0xff]  }
 0x276   : > { %1695 = vmatpush1.bf16.msra.mxu0 %v5101_v34  ;;  %v5187_v34 = vld [vmem:[%s7140_s5 + $0x12c] ss:$16 sps:$4 sm:$0xff]  }
 0x277   : > { %1696 = vmatprep.subr.bf16.mxu0 %v5106_v35  ;;  %v5185_v35 = vld [vmem:[%s7140_s5 + $0x128] ss:$16 sps:$4 sm:$0xff]  }
 0x27a   : > { %1697 = vmatpush1.bf16.msra.mxu0 %v5104_v36  ;;  %v5190_v36 = vld [vmem:[%s7140_s5 + $0x14c] ss:$16 sps:$4 sm:$0xff]  }
 0x27b   : > { %1698 = vmatprep.subr.bf16.mxu0 %v5109_v37  ;;  %v5188_v37 = vld [vmem:[%s7140_s5 + $0x148] ss:$16 sps:$4 sm:$0xff]  }
 0x27e   : > { %1699 = vmatpush1.bf16.msra.mxu0 %v5107_v39  ;;  %v5193_v39 = vld [vmem:[%s7140_s5 + $0x16c] ss:$16 sps:$4 sm:$0xff]  }
 0x27f   : > { %2031 = vmatprep.subr.bf16.mxu0 %v5112_v40  ;;  %v5191_v40 = vld [vmem:[%s7140_s5 + $0x168] ss:$16 sps:$4 sm:$0xff]  }
 0x281   : > { %1701 = vmatmul.mubr.bf16.vlgmr.msra.gmra.mrb[12].mxu0 %v6056_v1  ;;  %v5148_v1 = vld [vmem:[%s7140_s5 + $0x184] ss:$16 sps:$4 sm:$0xff]  }
 0x282   : > { %2032 = vmatpush1.bf16.msra.mxu0 %v5110_v41  ;;  %2063 = vmatprep.mubr.bf16.mxu0 %v6047_v57  ;;  %v5196_v41 = vld [vmem:[%s7140_s5 + $0x18c] ss:$16 sps:$4 sm:$0xff]  }
 0x283   : > { %2033 = vmatprep.subr.bf16.mxu0 %v5115_v42  ;;  %v5194_v42 = vld [vmem:[%s7140_s5 + $0x188] ss:$16 sps:$4 sm:$0xff]  }
 0x286   : > { %2034 = vmatpush1.bf16.msra.mxu0 %v5113_v43  ;;  %v5199_v43 = vld [vmem:[%s7140_s5 + $0x1ac] ss:$16 sps:$4 sm:$0xff]  }
 0x287   : > { %2035 = vmatprep.subr.bf16.mxu0 %v5118_v44  ;;  %v5197_v44 = vld [vmem:[%s7140_s5 + $0x1a8] ss:$16 sps:$4 sm:$0xff]  }
 0x28a   : > { %2036 = vmatpush1.bf16.msra.mxu0 %v5116_v45  ;;  %v5202_v45 = vld [vmem:[%s7140_s5 + $0x1cc] ss:$16 sps:$4 sm:$0xff]  }
 0x28b   : > { %2037 = vmatprep.subr.bf16.mxu0 %v5121_v46  ;;  %v5200_v46 = vld [vmem:[%s7140_s5 + $0x1c8] ss:$16 sps:$4 sm:$0xff]  }
 0x28e   : > { %2038 = vmatpush1.bf16.msra.mxu0 %v5119_v47  ;;  %v5205_v47 = vld [vmem:[%s7140_s5 + $0x1ec] ss:$16 sps:$4 sm:$0xff]  }
 0x28f   : > { %2039 = vmatprep.subr.bf16.mxu0 %v5124_v48  ;;  %v5203_v48 = vld [vmem:[%s7140_s5 + $0x1e8] ss:$16 sps:$4 sm:$0xff]  }
 0x292   : > { %2040 = vmatpush1.bf16.msra.mxu0 %v5122_v49  ;;  %v5208_v49 = vld [vmem:[%s7140_s5 + $0x404] ss:$16 sps:$4 sm:$0xff]  }
 0x293   : > { %2041 = vmatprep.subr.bf16.mxu0 %v5127_v50  ;;  %v5206_v50 = vld [vmem:[%s7140_s5 + $0x400] ss:$16 sps:$4 sm:$0xff]  }
 0x296   : > { %2042 = vmatpush1.bf16.msra.mxu0 %v5125_v51  ;;  %v5211_v51 = vld [vmem:[%s7140_s5 + $0x424] ss:$16 sps:$4 sm:$0xff]  }
 0x297   : > { %2043 = vmatprep.subr.bf16.mxu0 %v5130_v52  ;;  %v2185_v52 = vrot.slane %v6047_v57, 1 }
 0x29a   : > { %2044 = vmatpush1.bf16.msra.mxu0 %v5128_v53  ;;  %v5302_v53 = vld [vmem:[%s7142_s7] ss:$16 sps:$4 sm:$0xff]  }
 0x29b   : > { %2045 = vmatprep.subr.bf16.mxu0 %v5133_v54  ;;  %v5304_v54 = vld [vmem:[%s7142_s7 + $0x4] ss:$16 sps:$4 sm:$0xff]  }
 0x29c   : > { %3578 = vmatprep.subr.bf16.mxu1 %v5304_v54  ;;  %v5266_v54 = vld [vmem:[%s7140_s5 + $0x488] ss:$16 sps:$4 sm:$0xff]  }
 0x29d   : > { %3579 = vmatpush1.bf16.msra.mxu1 %v5302_v53  ;;  %v5268_v53 = vld [vmem:[%s7140_s5 + $0x48c] ss:$16 sps:$4 sm:$0xff]  }
 0x29e   : > { %2046 = vmatpush1.bf16.msra.mxu0 %v5131_v55  ;;  %v5209_v55 = vld [vmem:[%s7140_s5 + $0x420] ss:$16 sps:$4 sm:$0xff]  }
 0x29f   : > { %2047 = vmatprep.subr.bf16.mxu0 %v5136_v58  ;;  %v5307_v58 = vld [vmem:[%s7142_s7 + $0x24] ss:$16 sps:$4 sm:$0xff]  }
 0x2a0   : > { %3580 = vmatprep.subr.bf16.mxu1 %v5307_v58  ;;  %v5269_v58 = vld [vmem:[%s7140_s5 + $0x4a8] ss:$16 sps:$4 sm:$0xff]  }
 0x2a2   : > { %2048 = vmatpush1.bf16.msra.mxu0 %v5134_v38  ;;  %v5214_v38 = vld [vmem:[%s7140_s5 + $0x444] ss:$16 sps:$4 sm:$0xff]  }
 0x2a3   : > { %2049 = vmatprep.subr.bf16.mxu0 %v5139_v59  ;;  %v5305_v59 = vld [vmem:[%s7142_s7 + $0x20] ss:$16 sps:$4 sm:$0xff]  }
 0x2a4   : > { %3581 = vmatpush1.bf16.msra.mxu1 %v5305_v59  ;;  %v5272_v59 = vld [vmem:[%s7140_s5 + $0x4c8] ss:$16 sps:$4 sm:$0xff]  }
 0x2a6   : > { %2050 = vmatpush1.bf16.msra.mxu0 %v5137_v60  ;;  %v5310_v60 = vld [vmem:[%s7142_s7 + $0x44] ss:$16 sps:$4 sm:$0xff]  }
 0x2a7   : > { %2051 = vmatprep.subr.bf16.mxu0 %v5142_v61  ;;  %v5212_v61 = vld [vmem:[%s7140_s5 + $0x440] ss:$16 sps:$4 sm:$0xff]   ;;  %3582 = vmatprep.subr.bf16.mxu1 %v5310_v60  ;;  %v5277_v60 = vld [vmem:[%s7140_s5 + $0x4ec] ss:$16 sps:$4 sm:$0xff]  }
 0x2aa   : > { %2052 = vmatpush1.bf16.msra.mxu0 %v5140_v62  ;;  %v5217_v62 = vld [vmem:[%s7140_s5 + $0x464] ss:$16 sps:$4 sm:$0xff]  }
 0x2ab   : > { %2053 = vmatprep.subr.bf16.mxu0 %v5145_v63  ;;  %v5308_v63 = vld [vmem:[%s7142_s7 + $0x40] ss:$16 sps:$4 sm:$0xff]  }
 0x2ac   : > { %3583 = vmatpush1.bf16.msra.mxu1 %v5308_v63  ;;  %v5278_v63 = vld [vmem:[%s7140_s5 + $0x508] ss:$16 sps:$4 sm:$0xff]  }
 0x2ae   : > { %2054 = vmatpush1.bf16.msra.mxu0 %v5143_v0  ;;  %v5313_v0 = vld [vmem:[%s7142_s7 + $0x64] ss:$16 sps:$4 sm:$0xff]  }
 0x2af   : > { %2055 = vmatprep.subr.bf16.mxu0 %v5148_v1  ;;  %v5215_v1 = vld [vmem:[%s7140_s5 + $0x460] ss:$16 sps:$4 sm:$0xff]   ;;  %3584 = vmatprep.subr.bf16.mxu1 %v5313_v0  ;;  %v5283_v0 = vld [vmem:[%s7140_s5 + $0x52c] ss:$16 sps:$4 sm:$0xff]  }
 0x2b2   : > { %2056 = vmatpush1.bf16.msra.mxu0 %v5146_v2  ;;  %v5220_v2 = vld [vmem:[%s7140_s5 + $0x484] ss:$16 sps:$4 sm:$0xff]  }
 0x2b3   : > { %2057 = vmatprep.subr.bf16.mxu0 %v5151_v3  ;;  %v5311_v3 = vld [vmem:[%s7142_s7 + $0x60] ss:$16 sps:$4 sm:$0xff]  }
 0x2b4   : > { %3585 = vmatpush1.bf16.msra.mxu1 %v5311_v3  ;;  %v5284_v3 = vld [vmem:[%s7140_s5 + $0x548] ss:$16 sps:$4 sm:$0xff]  }
 0x2b6   : > { %2058 = vmatpush1.bf16.msra.mxu0 %v5149_v4  ;;  %v5316_v4 = vld [vmem:[%s7142_s7 + $0x84] ss:$16 sps:$4 sm:$0xff]  }
 0x2b7   : > { %2059 = vmatprep.subr.bf16.mxu0 %v5154_v5  ;;  %v5218_v5 = vld [vmem:[%s7140_s5 + $0x480] ss:$16 sps:$4 sm:$0xff]   ;;  %3586 = vmatprep.subr.bf16.mxu1 %v5316_v4  ;;  %v5289_v4 = vld [vmem:[%s7140_s5 + $0x56c] ss:$16 sps:$4 sm:$0xff]  }
 0x2ba   : > { %2060 = vmatpush1.bf16.msra.mxu0 %v5152_v7  ;;  %v5223_v7 = vld [vmem:[%s7140_s5 + $0x4a4] ss:$16 sps:$4 sm:$0xff]  }
 0x2bb   : > { %2061 = vmatprep.subr.bf16.mxu0 %v5157_v8  ;;  %v5314_v8 = vld [vmem:[%s7142_s7 + $0x80] ss:$16 sps:$4 sm:$0xff]  }
 0x2bc   : > { %3587 = vmatpush1.bf16.msra.mxu1 %v5314_v8  ;;  %v5290_v8 = vld [vmem:[%s7140_s5 + $0x588] ss:$16 sps:$4 sm:$0xff]  }
 0x2be   : > { %2062 = vmatpush1.bf16.msra.mxu0 %v5155_v10  ;;  %v5319_v10 = vld [vmem:[%s7142_s7 + $0xa4] ss:$16 sps:$4 sm:$0xff]  }
 0x2bf   : > { %2074 = vmatprep.subr.bf16.mxu0 %v5160_v11  ;;  %v5221_v11 = vld [vmem:[%s7140_s5 + $0x4a0] ss:$16 sps:$4 sm:$0xff]   ;;  %3588 = vmatprep.subr.bf16.mxu1 %v5319_v10  ;;  %v5295_v10 = vld [vmem:[%s7140_s5 + $0x5ac] ss:$16 sps:$4 sm:$0xff]  }
 0x2c1   : > { %2064 = vmatmul.mubr.bf16.vlgmr.msra.gmra.mrb[8].mxu0 %v6045_v56 }
 0x2c2   : > { %2075 = vmatpush1.bf16.msra.mxu0 %v5158_v12  ;;  %2106 = vmatprep.mubr.bf16.mxu0 %v6047_v57  ;;  %v5226_v12 = vld [vmem:[%s7140_s5 + $0x4c4] ss:$16 sps:$4 sm:$0xff]   ;;  %v5265_v57 = vld [vmem:[%s7140_s5 + $0x46c] ss:$16 sps:$4 sm:$0xff]  }
 0x2c3   : > { %2076 = vmatprep.subr.bf16.mxu0 %v5163_v14  ;;  %v5317_v14 = vld [vmem:[%s7142_s7 + $0xa0] ss:$16 sps:$4 sm:$0xff]  }
 0x2c4   : > { %3589 = vmatpush1.bf16.msra.mxu1 %v5317_v14  ;;  %v5296_v14 = vld [vmem:[%s7140_s5 + $0x5c8] ss:$16 sps:$4 sm:$0xff]  }
 0x2c6   : > { %2077 = vmatpush1.bf16.msra.mxu0 %v5161_v15  ;;  %v5322_v15 = vld [vmem:[%s7142_s7 + $0xc4] ss:$16 sps:$4 sm:$0xff]  }
 0x2c7   : > { %2078 = vmatprep.subr.bf16.mxu0 %v5166_v16  ;;  %v5224_v16 = vld [vmem:[%s7140_s5 + $0x4c0] ss:$16 sps:$4 sm:$0xff]   ;;  %3590 = vmatprep.subr.bf16.mxu1 %v5322_v15  ;;  %v5301_v15 = vld [vmem:[%s7140_s5 + $0x5ec] ss:$16 sps:$4 sm:$0xff]  }
 0x2ca   : > { %2079 = vmatpush1.bf16.msra.mxu0 %v5164_v17  ;;  %v5229_v17 = vld [vmem:[%s7140_s5 + $0x4e4] ss:$16 sps:$4 sm:$0xff]  }
 0x2cb   : > { %2080 = vmatprep.subr.bf16.mxu0 %v5169_v18  ;;  %v5320_v18 = vld [vmem:[%s7142_s7 + $0xc0] ss:$16 sps:$4 sm:$0xff]  }
 0x2cc   : > { %3591 = vmatpush1.bf16.msra.mxu1 %v5320_v18  ;;  %v5329_v18 = vld [vmem:[%s7142_s7 + $0x120] ss:$16 sps:$4 sm:$0xff]  }
 0x2ce   : > { %2081 = vmatpush1.bf16.msra.mxu0 %v5167_v21  ;;  %v5325_v21 = vld [vmem:[%s7142_s7 + $0xe4] ss:$16 sps:$4 sm:$0xff]  }
 0x2cf   : > { %2082 = vmatprep.subr.bf16.mxu0 %v5172_v22  ;;  %v5227_v22 = vld [vmem:[%s7140_s5 + $0x4e0] ss:$16 sps:$4 sm:$0xff]   ;;  %3592 = vmatprep.subr.bf16.mxu1 %v5325_v21  ;;  %v5334_v21 = vld [vmem:[%s7142_s7 + $0x144] ss:$16 sps:$4 sm:$0xff]  }
 0x2d2   : > { %2083 = vmatpush1.bf16.msra.mxu0 %v5170_v24  ;;  %v5232_v24 = vld [vmem:[%s7140_s5 + $0x504] ss:$16 sps:$4 sm:$0xff]  }
 0x2d3   : > { %2084 = vmatprep.subr.bf16.mxu0 %v5175_v25  ;;  %v5323_v25 = vld [vmem:[%s7142_s7 + $0xe0] ss:$16 sps:$4 sm:$0xff]  }
 0x2d4   : > { %3593 = vmatpush1.bf16.msra.mxu1 %v5323_v25  ;;  %v5340_v25 = vld [vmem:[%s7142_s7 + $0x184] ss:$16 sps:$4 sm:$0xff]  }
 0x2d6   : > { %2085 = vmatpush1.bf16.msra.mxu0 %v5173_v26  ;;  %v5328_v26 = vld [vmem:[%s7142_s7 + $0x104] ss:$16 sps:$4 sm:$0xff]  }
 0x2d7   : > { %2086 = vmatprep.subr.bf16.mxu0 %v5178_v27  ;;  %v5230_v27 = vld [vmem:[%s7140_s5 + $0x500] ss:$16 sps:$4 sm:$0xff]   ;;  %3594 = vmatprep.subr.bf16.mxu1 %v5328_v26 }
 0x2d8   : > { %v5338_v26 = vld [vmem:[%s7142_s7 + $0x180] ss:$16 sps:$4 sm:$0xff]  }
 0x2da   : > { %2087 = vmatpush1.bf16.msra.mxu0 %v5176_v29  ;;  %v5235_v29 = vld [vmem:[%s7140_s5 + $0x524] ss:$16 sps:$4 sm:$0xff]  }
 0x2db   : > { %2088 = vmatprep.subr.bf16.mxu0 %v5181_v30  ;;  %v5326_v30 = vld [vmem:[%s7142_s7 + $0x100] ss:$16 sps:$4 sm:$0xff]  }
 0x2dc   : > { %3595 = vmatpush1.bf16.msra.mxu1 %v5326_v30  ;;  %v5346_v30 = vld [vmem:[%s7142_s7 + $0x1c4] ss:$16 sps:$4 sm:$0xff]  }
 0x2de   : > { %2089 = vmatpush1.bf16.msra.mxu0 %v5179_v31  ;;  %v5233_v31 = vld [vmem:[%s7140_s5 + $0x520] ss:$16 sps:$4 sm:$0xff]  }
 0x2df   : > { %2090 = vmatprep.subr.bf16.mxu0 %v5184_v32  ;;  %v5238_v32 = vld [vmem:[%s7140_s5 + $0x544] ss:$16 sps:$4 sm:$0xff]  }
 0x2e2   : > { %2091 = vmatpush1.bf16.msra.mxu0 %v5182_v33  ;;  %v5236_v33 = vld [vmem:[%s7140_s5 + $0x540] ss:$16 sps:$4 sm:$0xff]  }
 0x2e3   : > { %2092 = vmatprep.subr.bf16.mxu0 %v5187_v34  ;;  %v5241_v34 = vld [vmem:[%s7140_s5 + $0x564] ss:$16 sps:$4 sm:$0xff]  }
 0x2e6   : > { %2093 = vmatpush1.bf16.msra.mxu0 %v5185_v35  ;;  %v5239_v35 = vld [vmem:[%s7140_s5 + $0x560] ss:$16 sps:$4 sm:$0xff]  }
 0x2e7   : > { %2094 = vmatprep.subr.bf16.mxu0 %v5190_v36  ;;  %v5244_v36 = vld [vmem:[%s7140_s5 + $0x584] ss:$16 sps:$4 sm:$0xff]  }
 0x2ea   : > { %2095 = vmatpush1.bf16.msra.mxu0 %v5188_v37  ;;  %v5242_v37 = vld [vmem:[%s7140_s5 + $0x580] ss:$16 sps:$4 sm:$0xff]  }
 0x2eb   : > { %2096 = vmatprep.subr.bf16.mxu0 %v5193_v39  ;;  %v5247_v39 = vld [vmem:[%s7140_s5 + $0x5a4] ss:$16 sps:$4 sm:$0xff]  }
 0x2ee   : > { %2097 = vmatpush1.bf16.msra.mxu0 %v5191_v40  ;;  %v5245_v40 = vld [vmem:[%s7140_s5 + $0x5a0] ss:$16 sps:$4 sm:$0xff]  }
 0x2ef   : > { %2098 = vmatprep.subr.bf16.mxu0 %v5196_v41  ;;  %v5250_v41 = vld [vmem:[%s7140_s5 + $0x5c4] ss:$16 sps:$4 sm:$0xff]  }
 0x2f2   : > { %2099 = vmatpush1.bf16.msra.mxu0 %v5194_v42  ;;  %v5248_v42 = vld [vmem:[%s7140_s5 + $0x5c0] ss:$16 sps:$4 sm:$0xff]  }
 0x2f3   : > { %2100 = vmatprep.subr.bf16.mxu0 %v5199_v43  ;;  %v5253_v43 = vld [vmem:[%s7140_s5 + $0x5e4] ss:$16 sps:$4 sm:$0xff]  }
 0x2f6   : > { %2101 = vmatpush1.bf16.msra.mxu0 %v5197_v44  ;;  %v5251_v44 = vld [vmem:[%s7140_s5 + $0x5e0] ss:$16 sps:$4 sm:$0xff]  }
 0x2f7   : > { %2102 = vmatprep.subr.bf16.mxu0 %v5202_v45  ;;  %v5256_v45 = vld [vmem:[%s7140_s5 + $0x40c] ss:$16 sps:$4 sm:$0xff]  }
 0x2fa   : > { %2103 = vmatpush1.bf16.msra.mxu0 %v5200_v46  ;;  %v5254_v46 = vld [vmem:[%s7140_s5 + $0x408] ss:$16 sps:$4 sm:$0xff]  }
 0x2fb   : > { %2104 = vmatprep.subr.bf16.mxu0 %v5205_v47  ;;  %v2184_v47 = vrot.slane %v6045_v56, 1 }
 0x2fe   : > { %2105 = vmatpush1.bf16.msra.mxu0 %v5203_v48  ;;  %v5259_v48 = vld [vmem:[%s7140_s5 + $0x42c] ss:$16 sps:$4 sm:$0xff]  }
 0x2ff   : > { %2508 = vmatprep.subr.bf16.mxu0 %v5208_v49  ;;  %v5257_v49 = vld [vmem:[%s7140_s5 + $0x428] ss:$16 sps:$4 sm:$0xff]  }
 0x301   : > { %2107 = vmatmul.mubr.bf16.vlgmr.msra.gmra.mrb[12].mxu0 %v6045_v56  ;;  %v5337_v56 = vld [vmem:[%s7142_s7 + $0x164] ss:$16 sps:$4 sm:$0xff]  }
 0x302   : > { %2509 = vmatpush1.bf16.msra.mxu0 %v5206_v50  ;;  %2540 = vmatprep.mubr.bf16.mxu0 %v2185_v52  ;;  %v5262_v50 = vld [vmem:[%s7140_s5 + $0x44c] ss:$16 sps:$4 sm:$0xff]  }
 0x303   : > { %2510 = vmatprep.subr.bf16.mxu0 %v5211_v51  ;;  %v5260_v51 = vld [vmem:[%s7140_s5 + $0x448] ss:$16 sps:$4 sm:$0xff]  }
 0x306   : > { %2511 = vmatpush1.bf16.msra.mxu0 %v5209_v55  ;;  %v5271_v55 = vld [vmem:[%s7140_s5 + $0x4ac] ss:$16 sps:$4 sm:$0xff]  }
 0x307   : > { %2512 = vmatprep.subr.bf16.mxu0 %v5214_v38  ;;  %v5274_v38 = vld [vmem:[%s7140_s5 + $0x4cc] ss:$16 sps:$4 sm:$0xff]  }
 0x30a   : > { %2513 = vmatpush1.bf16.msra.mxu0 %v5212_v61  ;;  %v5275_v61 = vld [vmem:[%s7140_s5 + $0x4e8] ss:$16 sps:$4 sm:$0xff]  }
 0x30b   : > { %2514 = vmatprep.subr.bf16.mxu0 %v5217_v62  ;;  %v5280_v62 = vld [vmem:[%s7140_s5 + $0x50c] ss:$16 sps:$4 sm:$0xff]  }
 0x30e   : > { %2515 = vmatpush1.bf16.msra.mxu0 %v5215_v1  ;;  %v5281_v1 = vld [vmem:[%s7140_s5 + $0x528] ss:$16 sps:$4 sm:$0xff]  }
 0x30f   : > { %2516 = vmatprep.subr.bf16.mxu0 %v5220_v2  ;;  %v5286_v2 = vld [vmem:[%s7140_s5 + $0x54c] ss:$16 sps:$4 sm:$0xff]  }
 0x312   : > { %2517 = vmatpush1.bf16.msra.mxu0 %v5218_v5  ;;  %v5287_v5 = vld [vmem:[%s7140_s5 + $0x568] ss:$16 sps:$4 sm:$0xff]  }
 0x313   : > { %2518 = vmatprep.subr.bf16.mxu0 %v5223_v7  ;;  %v5292_v7 = vld [vmem:[%s7140_s5 + $0x58c] ss:$16 sps:$4 sm:$0xff]  }
 0x316   : > { %2519 = vmatpush1.bf16.msra.mxu0 %v5221_v11  ;;  %v5293_v11 = vld [vmem:[%s7140_s5 + $0x5a8] ss:$16 sps:$4 sm:$0xff]  }
 0x317   : > { %2520 = vmatprep.subr.bf16.mxu0 %v5226_v12  ;;  %v5298_v12 = vld [vmem:[%s7140_s5 + $0x5cc] ss:$16 sps:$4 sm:$0xff]  }
 0x31a   : > { %2521 = vmatpush1.bf16.msra.mxu0 %v5224_v16  ;;  %v5299_v16 = vld [vmem:[%s7140_s5 + $0x5e8] ss:$16 sps:$4 sm:$0xff]  }
 0x31b   : > { %2522 = vmatprep.subr.bf16.mxu0 %v5229_v17  ;;  %v5331_v17 = vld [vmem:[%s7142_s7 + $0x124] ss:$16 sps:$4 sm:$0xff]  }
 0x31c   : > { %3596 = vmatprep.subr.bf16.mxu1 %v5331_v17 }
 0x31d   : > { %3597 = vmatpush1.bf16.msra.mxu1 %v5329_v18 }
 0x31e   : > { %2523 = vmatpush1.bf16.msra.mxu0 %v5227_v22  ;;  %v5332_v22 = vld [vmem:[%s7142_s7 + $0x140] ss:$16 sps:$4 sm:$0xff]   ;;  %3598 = vmatprep.subr.bf16.mxu1 %v5334_v21 }
 0x31f   : > { %2524 = vmatprep.subr.bf16.mxu0 %v5232_v24  ;;  %v5335_v24 = vld [vmem:[%s7142_s7 + $0x160] ss:$16 sps:$4 sm:$0xff]  }
 0x321   : > { %3599 = vmatpush1.bf16.msra.mxu1 %v5332_v22 }
 0x322   : > { %2525 = vmatpush1.bf16.msra.mxu0 %v5230_v27  ;;  %3600 = vmatprep.subr.bf16.mxu1 %v5337_v56  ;;  %v5343_v27 = vld [vmem:[%s7142_s7 + $0x1a4] ss:$16 sps:$4 sm:$0xff]  }
 0x323   : > { %2526 = vmatprep.subr.bf16.mxu0 %v5235_v29  ;;  %v5341_v29 = vld [vmem:[%s7142_s7 + $0x1a0] ss:$16 sps:$4 sm:$0xff]  }
 0x325   : > { %3601 = vmatpush1.bf16.msra.mxu1 %v5335_v24 }
 0x326   : > { %2527 = vmatpush1.bf16.msra.mxu0 %v5233_v31  ;;  %3602 = vmatprep.subr.bf16.mxu1 %v5340_v25  ;;  %v5344_v31 = vld [vmem:[%s7142_s7 + $0x1c0] ss:$16 sps:$4 sm:$0xff]  }
 0x327   : > { %2528 = vmatprep.subr.bf16.mxu0 %v5238_v32  ;;  %v5349_v32 = vld [vmem:[%s7142_s7 + $0x1e4] ss:$16 sps:$4 sm:$0xff]  }
 0x329   : > { %3603 = vmatpush1.bf16.msra.mxu1 %v5338_v26 }
 0x32a   : > { %2529 = vmatpush1.bf16.msra.mxu0 %v5236_v33  ;;  %3604 = vmatprep.subr.bf16.mxu1 %v5343_v27  ;;  %v5347_v33 = vld [vmem:[%s7142_s7 + $0x1e0] ss:$16 sps:$4 sm:$0xff]  }
 0x32b   : > { %2530 = vmatprep.subr.bf16.mxu0 %v5241_v34  ;;  %v5352_v34 = vld [vmem:[%s7142_s7 + $0x204] ss:$16 sps:$4 sm:$0xff]  }
 0x32d   : > { %3605 = vmatpush1.bf16.msra.mxu1 %v5341_v29 }
 0x32e   : > { %2531 = vmatpush1.bf16.msra.mxu0 %v5239_v35  ;;  %3606 = vmatprep.subr.bf16.mxu1 %v5346_v30  ;;  %v2602_v35 = vld [vmem:[%s7141_s6] sm:$0x77] }
 0x32f   : > { %2532 = vmatprep.subr.bf16.mxu0 %v5244_v36  ;;  %v2609_v36 = vrot.slane %v2602_v35, %v5870_v9  ;;  %v5350_v30 = vld [vmem:[%s7142_s7 + $0x200] ss:$16 sps:$4 sm:$0xff]  }
 0x331   : > { %3607 = vmatpush1.bf16.msra.mxu1 %v5344_v31 }
 0x332   : > { %2533 = vmatpush1.bf16.msra.mxu0 %v5242_v37  ;;  %3608 = vmatprep.subr.bf16.mxu1 %v5349_v32  ;;  %v2613_v37 = vrot.slane %v2602_v35, %v6025_v19  ;;  %v5355_v32 = vld [vmem:[%s7142_s7 + $0x224] ss:$16 sps:$4 sm:$0xff]  }
 0x333   : > { %2534 = vmatprep.subr.bf16.mxu0 %v5247_v39  ;;  %v2629_v39 = vrot.slane %v2609_v36, %v5870_v9  ;;  %v5361_v36 = vld [vmem:[%s7142_s7 + $0x264] ss:$16 sps:$4 sm:$0xff]  }
 0x335   : > { %3609 = vmatpush1.bf16.msra.mxu1 %v5347_v33  ;;  %v5353_v33 = vld [vmem:[%s7142_s7 + $0x220] ss:$16 sps:$4 sm:$0xff]  }
 0x336   : > { %2535 = vmatpush1.bf16.msra.mxu0 %v5245_v40  ;;  %3619 = vmatprep.subr.bf16.mxu1 %v5352_v34  ;;  %v2661_v40 = vrot.slane %v2602_v35, %v5880_v13  ;;  %v5358_v34 = vld [vmem:[%s7142_s7 + $0x244] ss:$16 sps:$4 sm:$0xff]  }
 0x337   : > { %2536 = vmatprep.subr.bf16.mxu0 %v5250_v41  ;;  %v2633_v41 = vrot.slane %v2613_v37, %v5870_v9  ;;  %v5359_v37 = vld [vmem:[%s7142_s7 + $0x260] ss:$16 sps:$4 sm:$0xff]  }
 0x33a   : > { %2537 = vmatpush1.bf16.msra.mxu0 %v5248_v42  ;;  %v2665_v42 = vrot.slane %v2602_v35, %v6030_v23 }
 0x33b   : > { %2538 = vmatprep.subr.bf16.mxu0 %v5253_v43 }
 0x33e   : > { %2539 = vmatpush1.bf16.msra.mxu0 %v5251_v44 }
 0x33f   : > { %2551 = vmatprep.subr.bf16.mxu0 %v5256_v45 }
 0x341   : > { %2541 = vmatmul.mubr.bf16.vlgmr.msra.gmra.mrb[8].mxu0 %v2184_v47 }
 0x342   : > { %2552 = vmatpush1.bf16.msra.mxu0 %v5254_v46  ;;  %2583 = vmatprep.mubr.bf16.mxu0 %v2185_v52  ;;  %v5263_v52 = vld [vmem:[%s7140_s5 + $0x468] ss:$16 sps:$4 sm:$0xff]   ;;  %v2681_v46 = vrot.slane %v2661_v40, %v5880_v13  ;;  %v5362_v40 = vld [vmem:[%s7142_s7 + $0x280] ss:$16 sps:$4 sm:$0xff]  }
 0x343   : > { %2553 = vmatprep.subr.bf16.mxu0 %v5259_v48 }
 0x346   : > { %2554 = vmatpush1.bf16.msra.mxu0 %v5257_v49 }
 0x347   : > { %2555 = vmatprep.subr.bf16.mxu0 %v5262_v50 }
 0x34a   : > { %2556 = vmatpush1.bf16.msra.mxu0 %v5260_v51  ;;  %v2685_v51 = vrot.slane %v2665_v42, %v5880_v13  ;;  %v5365_v42 = vld [vmem:[%s7142_s7 + $0x2a0] ss:$16 sps:$4 sm:$0xff]  }
 0x34b   : > { %2557 = vmatprep.subr.bf16.mxu0 %v5265_v57  ;;  %v2709_v57 = vrot.slane %v2602_v35, %v6037_v28 }
 0x34e   : > { %2558 = vmatpush1.bf16.msra.mxu0 %v5263_v52 }
 0x34f   : > { %2559 = vmatprep.subr.bf16.mxu0 %v5268_v53 }
 0x352   : > { %2560 = vmatpush1.bf16.msra.mxu0 %v5266_v54 }
 0x353   : > { %2561 = vmatprep.subr.bf16.mxu0 %v5271_v55 }
 0x356   : > { %2562 = vmatpush1.bf16.msra.mxu0 %v5269_v58 }
 0x357   : > { %2563 = vmatprep.subr.bf16.mxu0 %v5274_v38 }
 0x35a   : > { %2564 = vmatpush1.bf16.msra.mxu0 %v5272_v59 }
 0x35b   : > { %2565 = vmatprep.subr.bf16.mxu0 %v5277_v60 }
 0x35e   : > { %2566 = vmatpush1.bf16.msra.mxu0 %v5275_v61 }
 0x35f   : > { %2567 = vmatprep.subr.bf16.mxu0 %v5280_v62  ;;  %v2729_v62 = vrot.slane %v2709_v57, %v5884_v20 }
 0x362   : > { %2568 = vmatpush1.bf16.msra.mxu0 %v5278_v63 }
 0x363   : > { %2569 = vmatprep.subr.bf16.mxu0 %v5283_v0 }
 0x366   : > { %2570 = vmatpush1.bf16.msra.mxu0 %v5281_v1 }
 0x367   : > { %2571 = vmatprep.subr.bf16.mxu0 %v5286_v2 }
 0x36a   : > { %2572 = vmatpush1.bf16.msra.mxu0 %v5284_v3 }
 0x36b   : > { %2573 = vmatprep.subr.bf16.mxu0 %v5289_v4 }
 0x36e   : > { %2574 = vmatpush1.bf16.msra.mxu0 %v5287_v5 }
 0x36f   : > { %2575 = vmatprep.subr.bf16.mxu0 %v5292_v7 }
 0x372   : > { %2576 = vmatpush1.bf16.msra.mxu0 %v5290_v8 }
 0x373   : > { %2577 = vmatprep.subr.bf16.mxu0 %v5295_v10 }
 0x376   : > { %2578 = vmatpush1.bf16.msra.mxu0 %v5293_v11 }
 0x377   : > { %2579 = vmatprep.subr.bf16.mxu0 %v5298_v12 }
 0x37a   : > { %2580 = vmatpush1.bf16.msra.mxu0 %v5296_v14 }
 0x37b   : > { %2581 = vmatprep.subr.bf16.mxu0 %v5301_v15 }
 0x37e   : > { %2582 = vmatpush1.bf16.msra.mxu0 %v5299_v16 }
 0x381   : > { %2584 = vmatmul.mubr.bf16.vlgmr.msra.gmra.mrb[12].mxu0 %v2184_v47  ;;  %v2705_v47 = vrot.slane %v2602_v35, %v5884_v20  ;;  %v5356_v35 = vld [vmem:[%s7142_s7 + $0x240] ss:$16 sps:$4 sm:$0xff]  }
 0x383   : > { %v2725_v59 = vrot.slane %v2705_v47, %v5884_v20  ;;  %v5371_v47 = vld [vmem:[%s7142_s7 + $0x2e0] ss:$16 sps:$4 sm:$0xff]  }
 0x414   : > { %v2542_v43 = vpop.f32.mrb[8].mxu0 }
 0x415   : > { %v2642_v44 = vadd.f32 %v2629_v39, %v2542_v43  ;;  %v2544_v45 = vpop.f32.mrb[9].mxu0  ;;  %v5370_v43 = vld [vmem:[%s7142_s7 + $0x2c4] ss:$16 sps:$4 sm:$0xff]  }
 0x416   : > { %v2643_v48 = vadd.f32 %v2633_v41, %v2544_v45  ;;  %v2546_v49 = vpop.f32.mrb[10].mxu0  ;;  %v5373_v45 = vld [vmem:[%s7142_s7 + $0x2e4] ss:$16 sps:$4 sm:$0xff]  }
 0x417   : > { %v2650_v50 = vmax.f32 %v2642_v44, 0.0  ;;  %v2646_v52 = vadd.f32 %v2629_v39, %v2546_v49  ;;  %v2548_v53 = vpop.f32.mrb[11].mxu0  ;;  %v5364_v39 = vld [vmem:[%s7142_s7 + $0x284] ss:$16 sps:$4 sm:$0xff]   ;;  %v5368_v44 = vld [vmem:[%s7142_s7 + $0x2c0] ss:$16 sps:$4 sm:$0xff]  }
 0x418   : > { %v2651_v54 = vmax.f32 %v2643_v48, 0.0  ;;  %v2647_v55 = vadd.f32 %v2633_v41, %v2548_v53  ;;  %v5367_v41 = vld [vmem:[%s7142_s7 + $0x2a4] ss:$16 sps:$4 sm:$0xff]  }
 0x419   : > { %v2654_v58 = vmax.f32 %v2646_v52, 0.0  ;;  %v2694_v38 = vmul.f32 %v2681_v46, %v2650_v50  ;;  %v5376_v49 = vld [vmem:[%s7142_s7 + $0x304] ss:$16 sps:$4 sm:$0xff]  }
 0x41a   : > { %v2655_v60 = vmax.f32 %v2647_v55, 0.0  ;;  %v2695_v61 = vmul.f32 %v2685_v51, %v2651_v54  ;;  %v5379_v54 = vld [vmem:[%s7142_s7 + $0x324] ss:$16 sps:$4 sm:$0xff]  }
 0x41b   : > { %v2698_v63 = vmul.f32 %v2681_v46, %v2654_v58  ;;  %v2738_v2 = vadd.f32 %v2725_v59, %v2694_v38  ;;  %v2603_v46 = vld [vmem:[%s7141_s6 + $0x8] sm:$0x77] }
 0x41c   : > { %v2699_v0 = vmul.f32 %v2685_v51, %v2655_v60  ;;  %v2739_v4 = vadd.f32 %v2729_v62, %v2695_v61  ;;  %v2617_v48 = vrot.slane %v2603_v46, %v5870_v9  ;;  %v2621_v50 = vrot.slane %v2603_v46, %v6025_v19  ;;  %v5374_v51 = vld [vmem:[%s7142_s7 + $0x300] ss:$16 sps:$4 sm:$0xff]  }
 0x41d   : > { %v2742_v1 = vadd.f32 %v2725_v59, %v2698_v63  ;;  %v2669_v52 = vrot.slane %v2603_v46, %v5880_v13  ;;  %v2673_v55 = vrot.slane %v2603_v46, %v6030_v23  ;;  %v5377_v59 = vld [vmem:[%s7142_s7 + $0x320] ss:$16 sps:$4 sm:$0xff]   ;;  %v2713_v61 = vrot.slane %v2603_v46, %v5884_v20 }
 0x41e   : > { %v2743_v3 = vadd.f32 %v2729_v62, %v2699_v0  ;;  %v2637_v57 = vrot.slane %v2617_v48, %v5870_v9  ;;  %v2641_v53 = vrot.slane %v2621_v50, %v5870_v9  ;;  %v5382_v0 = vld [vmem:[%s7142_s7 + $0x344] ss:$16 sps:$4 sm:$0xff]  }
 0x41f   : > { %v2747_v5 = vsel %vm2746_vm3, %v2742_v1, 0.0  ;;  %v2689_v60 = vrot.slane %v2669_v52, %v5880_v13  ;;  %v2693_v1 = vrot.slane %v2673_v55, %v5880_v13  ;;  %v5397_v48 = vld [vmem:[%s7142_s7 + $0x3e4] ss:$16 sps:$4 sm:$0xff]  }
 0x420   : > { %v2748_v7 = vadd.f32 %v2747_v5, %v2738_v2  ;;  %v2755_v8 = vsel %vm2746_vm3, %v2743_v3, 0.0  ;;  %v2717_v2 = vrot.slane %v2603_v46, %v6037_v28  ;;  %v5392_v46 = vld [vmem:[%s7142_s7 + $0x3c0] ss:$16 sps:$4 sm:$0xff]  }
 0x421   : > { %v2756_v10 = vadd.f32 %v2755_v8, %v2739_v4 }
 0x422   : > { %v2749_v11 = vrot.slane %v2748_v7, 4 }
 0x423   : > { %v2757_v12 = vrot.slane %v2756_v10, 4 }
 0x424   : > { %v2750_v14 = vadd.f32 %v2749_v11, %v2748_v7 }
 0x425   : > { %v2758_v15 = vadd.f32 %v2757_v12, %v2756_v10  ;;  %v5380_v10 = vld [vmem:[%s7142_s7 + $0x340] ss:$16 sps:$4 sm:$0xff]   ;;  %v2733_v12 = vrot.slane %v2713_v61, %v5884_v20  ;;  %v5406_v61 = vld [vmem:[%s7142_s7 + $0x4c] ss:$16 sps:$4 sm:$0xff]  }
 0x426   : > { %v2751_v16 = vrot.slane %v2750_v14, 2 }
 0x427   : > { %v2759_v17 = vrot.slane %v2758_v15, 2 }
 0x428   : > { %v2752_v18 = vadd.f32 %v2751_v16, %v2750_v14  ;;  %v2737_v16 = vrot.slane %v2717_v2, %v5884_v20  ;;  %v5413_v2 = vld [vmem:[%s7142_s7 + $0xa8] ss:$16 sps:$4 sm:$0xff]  }
 0x429   : > { %v2760_v21 = vadd.f32 %v2759_v17, %v2758_v15  ;;  %v5385_v15 = vld [vmem:[%s7142_s7 + $0x364] ss:$16 sps:$4 sm:$0xff]  }
 0x42a   : > { %v2753_v22 = vrot.slane %v2752_v18, 1 }
 0x42b   : > { %v2761_v56 = vrot.slane %v2760_v21, 1 }
 0x42c   : > { %v2754_v24 = vadd.f32 %v2753_v22, %v2752_v18  ;;  %v5383_v22 = vld [vmem:[%s7142_s7 + $0x360] ss:$16 sps:$4 sm:$0xff]  }
 0x42d   : > { %v2762_v25 = vadd.f32 %v2761_v56, %v2760_v21 }
 0x42e   : > { %v2780_v26 = vmul.f32 0.1, %v2754_v24 }
 0x42f   : > { %v2781_v27 = vmul.f32 0.1, %v2762_v25  ;;  %v5388_v25 = vld [vmem:[%s7142_s7 + $0x384] ss:$16 sps:$4 sm:$0xff]  }
 0x430   : > { %v6669_v31 = vpack.c.bf16 %v2780_v26, %v2780_v26 }
 0x431   : > { %v6664_v29 = vpack.c.bf16 %v2781_v27, %v2781_v27 }
 0x433   : > { %3610 = vmatprep.mubr.bf16.mxu1 %v6664_v29 }
 0x434   : > { %3611 = vmatmul.mubr.bf16.vlgmr.msra.gmra.mrb[8].mxu1 %v6669_v31 }
 0x435   : > { %3620 = vmatpush1.bf16.msra.mxu1 %v5350_v30 }
 0x436   : > { %3621 = vmatprep.subr.bf16.mxu1 %v5355_v32 }
 0x439   : > { %3622 = vmatpush1.bf16.msra.mxu1 %v5353_v33 }
 0x43a   : > { %3623 = vmatprep.subr.bf16.mxu1 %v5358_v34  ;;  %v5386_v34 = vld [vmem:[%s7142_s7 + $0x380] ss:$16 sps:$4 sm:$0xff]  }
 0x43d   : > { %3624 = vmatpush1.bf16.msra.mxu1 %v5356_v35 }
 0x43e   : > { %3625 = vmatprep.subr.bf16.mxu1 %v5361_v36  ;;  %v5391_v36 = vld [vmem:[%s7142_s7 + $0x3a4] ss:$16 sps:$4 sm:$0xff]  }
 0x441   : > { %3626 = vmatpush1.bf16.msra.mxu1 %v5359_v37 }
 0x442   : > { %3627 = vmatprep.subr.bf16.mxu1 %v5364_v39 }
 0x445   : > { %3628 = vmatpush1.bf16.msra.mxu1 %v5362_v40  ;;  %v5389_v40 = vld [vmem:[%s7142_s7 + $0x3a0] ss:$16 sps:$4 sm:$0xff]  }
 0x446   : > { %3629 = vmatprep.subr.bf16.mxu1 %v5367_v41 }
 0x449   : > { %3630 = vmatpush1.bf16.msra.mxu1 %v5365_v42 }
 0x44a   : > { %3631 = vmatprep.subr.bf16.mxu1 %v5370_v43  ;;  %v5394_v43 = vld [vmem:[%s7142_s7 + $0x3c4] ss:$16 sps:$4 sm:$0xff]  }
 0x44d   : > { %3632 = vmatpush1.bf16.msra.mxu1 %v5368_v44 }
 0x44e   : > { %3633 = vmatprep.subr.bf16.mxu1 %v5373_v45 }
 0x451   : > { %3634 = vmatpush1.bf16.msra.mxu1 %v5371_v47 }
 0x452   : > { %3635 = vmatprep.subr.bf16.mxu1 %v5376_v49 }
 0x454   : > { %v2585_v58 = vpop.f32.mrb[12].mxu0 }
 0x455   : > { %v2644_v19 = vadd.f32 %v2637_v57, %v2585_v58  ;;  %3636 = vmatpush1.bf16.msra.mxu1 %v5374_v51  ;;  %v2587_v38 = vpop.f32.mrb[13].mxu0 }
 0x456   : > { %v2645_v62 = vadd.f32 %v2641_v53, %v2587_v38  ;;  %v2589_v63 = vpop.f32.mrb[14].mxu0  ;;  %3637 = vmatprep.subr.bf16.mxu1 %v5379_v54 }
 0x457   : > { %v2652_v23 = vmax.f32 %v2644_v19, 0.0  ;;  %v2648_v3 = vadd.f32 %v2637_v57, %v2589_v63  ;;  %v2591_v4 = vpop.f32.mrb[15].mxu0  ;;  %v5395_v57 = vld [vmem:[%s7142_s7 + $0x3e0] ss:$16 sps:$4 sm:$0xff]   ;;  %v5398_v19 = vld [vmem:[%s7142_s7 + $0x8] ss:$16 sps:$4 sm:$0xff]  }
 0x458   : > { %v2653_v5 = vmax.f32 %v2645_v62, 0.0  ;;  %v2649_v7 = vadd.f32 %v2641_v53, %v2591_v4  ;;  %v5400_v53 = vld [vmem:[%s7142_s7 + $0xc] ss:$16 sps:$4 sm:$0xff]   ;;  %v5404_v62 = vld [vmem:[%s7142_s7 + $0x48] ss:$16 sps:$4 sm:$0xff]  }
 0x459   : > { %v2656_v8 = vmax.f32 %v2648_v3, 0.0  ;;  %3638 = vmatpush1.bf16.msra.mxu1 %v5377_v59  ;;  %v2696_v11 = vmul.f32 %v2689_v60, %v2652_v23  ;;  %v5403_v59 = vld [vmem:[%s7142_s7 + $0x2c] ss:$16 sps:$4 sm:$0xff]   ;;  %v5410_v23 = vld [vmem:[%s7142_s7 + $0x88] ss:$16 sps:$4 sm:$0xff]  }
 0x45a   : > { %v2657_v14 = vmax.f32 %v2649_v7, 0.0  ;;  %3639 = vmatprep.subr.bf16.mxu1 %v5382_v0  ;;  %v2697_v28 = vmul.f32 %v2693_v1, %v2653_v5  ;;  %v5409_v63 = vld [vmem:[%s7142_s7 + $0x6c] ss:$16 sps:$4 sm:$0xff]   ;;  %v5416_v4 = vld [vmem:[%s7142_s7 + $0xc8] ss:$16 sps:$4 sm:$0xff]  }
 0x45b   : > { %v2700_v17 = vmul.f32 %v2689_v60, %v2656_v8  ;;  %v2740_v56 = vadd.f32 %v2733_v12, %v2696_v11  ;;  %v5401_v60 = vld [vmem:[%s7142_s7 + $0x28] ss:$16 sps:$4 sm:$0xff]   ;;  %v5412_v0 = vld [vmem:[%s7142_s7 + $0x8c] ss:$16 sps:$4 sm:$0xff]  }
 0x45c   : > { %v2701_v18 = vmul.f32 %v2693_v1, %v2657_v14  ;;  %v2741_v26 = vadd.f32 %v2737_v16, %v2697_v28  ;;  %v5415_v1 = vld [vmem:[%s7142_s7 + $0xac] ss:$16 sps:$4 sm:$0xff]   ;;  %v5419_v7 = vld [vmem:[%s7142_s7 + $0xe8] ss:$16 sps:$4 sm:$0xff]  }
 0x45d   : > { %v2744_v21 = vadd.f32 %v2733_v12, %v2700_v17  ;;  %3640 = vmatpush1.bf16.msra.mxu1 %v5380_v10  ;;  %v5418_v3 = vld [vmem:[%s7142_s7 + $0xcc] ss:$16 sps:$4 sm:$0xff]   ;;  %v5422_v10 = vld [vmem:[%s7142_s7 + $0x108] ss:$16 sps:$4 sm:$0xff]  }
 0x45e   : > { %v2745_v24 = vadd.f32 %v2737_v16, %v2701_v18  ;;  %3641 = vmatprep.subr.bf16.mxu1 %v5385_v15  ;;  %v5421_v5 = vld [vmem:[%s7142_s7 + $0xec] ss:$16 sps:$4 sm:$0xff]   ;;  %v5425_v12 = vld [vmem:[%s7142_s7 + $0x128] ss:$16 sps:$4 sm:$0xff]  }
 0x45f   : > { %v2763_v27 = vsel %vm2746_vm3, %v2744_v21, 0.0  ;;  %v5424_v8 = vld [vmem:[%s7142_s7 + $0x10c] ss:$16 sps:$4 sm:$0xff]   ;;  %v5428_v15 = vld [vmem:[%s7142_s7 + $0x148] ss:$16 sps:$4 sm:$0xff]  }
 0x460   : > { %v2764_v30 = vadd.f32 %v2763_v27, %v2740_v56  ;;  %v2771_v32 = vsel %vm2746_vm3, %v2745_v24, 0.0  ;;  %v5427_v11 = vld [vmem:[%s7142_s7 + $0x12c] ss:$16 sps:$4 sm:$0xff]   ;;  %v5431_v16 = vld [vmem:[%s7142_s7 + $0x168] ss:$16 sps:$4 sm:$0xff]  }
 0x461   : > { %v2772_v33 = vadd.f32 %v2771_v32, %v2741_v26  ;;  %3642 = vmatpush1.bf16.msra.mxu1 %v5383_v22  ;;  %v5430_v14 = vld [vmem:[%s7142_s7 + $0x14c] ss:$16 sps:$4 sm:$0xff]   ;;  %v5434_v18 = vld [vmem:[%s7142_s7 + $0x188] ss:$16 sps:$4 sm:$0xff]  }
 0x462   : > { %v2765_v35 = vrot.slane %v2764_v30, 4  ;;  %3643 = vmatprep.subr.bf16.mxu1 %v5388_v25  ;;  %v5433_v28 = vld [vmem:[%s7142_s7 + $0x16c] ss:$16 sps:$4 sm:$0xff]   ;;  %v5437_v22 = vld [vmem:[%s7142_s7 + $0x1a8] ss:$16 sps:$4 sm:$0xff]  }
 0x463   : > { %v2773_v37 = vrot.slane %v2772_v33, 4  ;;  %v5436_v17 = vld [vmem:[%s7142_s7 + $0x18c] ss:$16 sps:$4 sm:$0xff]   ;;  %v5440_v24 = vld [vmem:[%s7142_s7 + $0x1c8] ss:$16 sps:$4 sm:$0xff]  }
 0x464   : > { %v2766_v39 = vadd.f32 %v2765_v35, %v2764_v30  ;;  %v5439_v21 = vld [vmem:[%s7142_s7 + $0x1ac] ss:$16 sps:$4 sm:$0xff]   ;;  %v5443_v26 = vld [vmem:[%s7142_s7 + $0x1e8] ss:$16 sps:$4 sm:$0xff]  }
 0x465   : > { %3644 = vmatpush1.bf16.msra.mxu1 %v5386_v34  ;;  %v2774_v41 = vadd.f32 %v2773_v37, %v2772_v33  ;;  %v5442_v56 = vld [vmem:[%s7142_s7 + $0x1cc] ss:$16 sps:$4 sm:$0xff]   ;;  %v5446_v30 = vld [vmem:[%s7142_s7 + $0x208] ss:$16 sps:$4 sm:$0xff]  }
 0x466   : > { %v2767_v42 = vrot.slane %v2766_v39, 2  ;;  %3645 = vmatprep.subr.bf16.mxu1 %v5391_v36  ;;  %v5445_v25 = vld [vmem:[%s7142_s7 + $0x1ec] ss:$16 sps:$4 sm:$0xff]   ;;  %v5449_v33 = vld [vmem:[%s7142_s7 + $0x228] ss:$16 sps:$4 sm:$0xff]  }
 0x467   : > { %v2775_v44 = vrot.slane %v2774_v41, 2  ;;  %v5448_v27 = vld [vmem:[%s7142_s7 + $0x20c] ss:$16 sps:$4 sm:$0xff]   ;;  %v5452_v35 = vld [vmem:[%s7142_s7 + $0x248] ss:$16 sps:$4 sm:$0xff]  }
 0x468   : > { %v2768_v45 = vadd.f32 %v2767_v42, %v2766_v39  ;;  %v5451_v32 = vld [vmem:[%s7142_s7 + $0x22c] ss:$16 sps:$4 sm:$0xff]   ;;  %v5455_v36 = vld [vmem:[%s7142_s7 + $0x268] ss:$16 sps:$4 sm:$0xff]  }
 0x469   : > { %3646 = vmatpush1.bf16.msra.mxu1 %v5389_v40  ;;  %v2776_v47 = vadd.f32 %v2775_v44, %v2774_v41  ;;  %v5454_v34 = vld [vmem:[%s7142_s7 + $0x24c] ss:$16 sps:$4 sm:$0xff]   ;;  %v5458_v39 = vld [vmem:[%s7142_s7 + $0x288] ss:$16 sps:$4 sm:$0xff]  }
 0x46a   : > { %3647 = vmatprep.subr.bf16.mxu1 %v5394_v43  ;;  %v2769_v49 = vrot.slane %v2768_v45, 1  ;;  %v5460_v37 = vld [vmem:[%s7142_s7 + $0x28c] ss:$16 sps:$4 sm:$0xff]   ;;  %v5461_v41 = vld [vmem:[%s7142_s7 + $0x2a8] ss:$16 sps:$4 sm:$0xff]  }
 0x46b   : > { %v2777_v50 = vrot.slane %v2776_v47, 1  ;;  %v5463_v40 = vld [vmem:[%s7142_s7 + $0x2ac] ss:$16 sps:$4 sm:$0xff]   ;;  %v5464_v43 = vld [vmem:[%s7142_s7 + $0x2c8] ss:$16 sps:$4 sm:$0xff]  }
 0x46c   : > { %v2770_v51 = vadd.f32 %v2769_v49, %v2768_v45  ;;  %v5466_v42 = vld [vmem:[%s7142_s7 + $0x2cc] ss:$16 sps:$4 sm:$0xff]   ;;  %v5467_v45 = vld [vmem:[%s7142_s7 + $0x2e8] ss:$16 sps:$4 sm:$0xff]  }
 0x46d   : > { %3648 = vmatpush1.bf16.msra.mxu1 %v5392_v46  ;;  %v2778_v52 = vadd.f32 %v2777_v50, %v2776_v47  ;;  %v5469_v44 = vld [vmem:[%s7142_s7 + $0x2ec] ss:$16 sps:$4 sm:$0xff]   ;;  %v5470_v47 = vld [vmem:[%s7142_s7 + $0x308] ss:$16 sps:$4 sm:$0xff]  }
 0x46e   : > { %3649 = vmatprep.subr.bf16.mxu1 %v5397_v48  ;;  %v2782_v54 = vmul.f32 0.1, %v2770_v51  ;;  %v5472_v46 = vld [vmem:[%s7142_s7 + $0x30c] ss:$16 sps:$4 sm:$0xff]   ;;  %v5473_v49 = vld [vmem:[%s7142_s7 + $0x328] ss:$16 sps:$4 sm:$0xff]  }
 0x46f   : > { %v2783_v55 = vmul.f32 0.1, %v2778_v52  ;;  %v5475_v48 = vld [vmem:[%s7142_s7 + $0x32c] ss:$16 sps:$4 sm:$0xff]   ;;  %v5476_v51 = vld [vmem:[%s7142_s7 + $0x348] ss:$16 sps:$4 sm:$0xff]  }
 0x470   : > { %v6788_v38 = vpack.c.bf16 %v2782_v54, %v2782_v54  ;;  %v5478_v50 = vld [vmem:[%s7142_s7 + $0x34c] ss:$16 sps:$4 sm:$0xff]   ;;  %v5479_v52 = vld [vmem:[%s7142_s7 + $0x368] ss:$16 sps:$4 sm:$0xff]  }
 0x471   : > { %3650 = vmatpush1.bf16.msra.mxu1 %v5395_v57  ;;  %v6783_v58 = vpack.c.bf16 %v2783_v55, %v2783_v55  ;;  %v5481_v57 = vld [vmem:[%s7142_s7 + $0x36c] ss:$16 sps:$4 sm:$0xff]   ;;  %v5482_v54 = vld [vmem:[%s7142_s7 + $0x388] ss:$16 sps:$4 sm:$0xff]  }
 0x472   : > { %3660 = vmatprep.subr.bf16.mxu1 %v5400_v53  ;;  %v5484_v53 = vld [vmem:[%s7142_s7 + $0x38c] ss:$16 sps:$4 sm:$0xff]  }
 0x473   : > { %3651 = vmatprep.mubr.bf16.mxu1 %v6783_v58  ;;  %v5487_v55 = vld [vmem:[%s7142_s7 + $0x3ac] ss:$16 sps:$4 sm:$0xff]  }
 0x474   : > { %3652 = vmatmul.mubr.bf16.vlgmr.msra.gmra.mrb[8].mxu1 %v6788_v38 }
 0x475   : > { %3661 = vmatpush1.bf16.msra.mxu1 %v5398_v19  ;;  %3692 = vmatprep.mubr.bf16.mxu1 %v6664_v29  ;;  %v5407_v29 = vld [vmem:[%s7142_s7 + $0x68] ss:$16 sps:$4 sm:$0xff]   ;;  %v5490_v19 = vld [vmem:[%s7142_s7 + $0x3cc] ss:$16 sps:$4 sm:$0xff]  }
 0x476   : > { %3662 = vmatprep.subr.bf16.mxu1 %v5403_v59  ;;  %v5488_v59 = vld [vmem:[%s7142_s7 + $0x3c8] ss:$16 sps:$4 sm:$0xff]  }
 0x479   : > { %3663 = vmatpush1.bf16.msra.mxu1 %v5401_v60  ;;  %v5493_v60 = vld [vmem:[%s7142_s7 + $0x3ec] ss:$16 sps:$4 sm:$0xff]  }
 0x47a   : > { %3664 = vmatprep.subr.bf16.mxu1 %v5406_v61  ;;  %v5491_v61 = vld [vmem:[%s7142_s7 + $0x3e8] ss:$16 sps:$4 sm:$0xff]  }
 0x47d   : > { %3665 = vmatpush1.bf16.msra.mxu1 %v5404_v62  ;;  %v5494_v62 = vld [vmem:[%s7144_s9 + $0x40] sm:$0xff]  }
 0x47e   : > { %3666 = vmatprep.subr.bf16.mxu1 %v5409_v63  ;;  %v5495_v63 = vld [vmem:[%s7144_s9] sm:$0xff]  }
 0x481   : > { %3667 = vmatpush1.bf16.msra.mxu1 %v5407_v29  ;;  %v5496_v29 = vld [vmem:[%s7144_s9 + $0x48] sm:$0xff]  }
 0x482   : > { %3668 = vmatprep.subr.bf16.mxu1 %v5412_v0  ;;  %v5497_v0 = vld [vmem:[%s7144_s9 + $0x8] sm:$0xff]  }
 0x485   : > { %3669 = vmatpush1.bf16.msra.mxu1 %v5410_v23  ;;  %v5498_v23 = vld [vmem:[%s7144_s9 + $0x50] sm:$0xff]  }
 0x486   : > { %3670 = vmatprep.subr.bf16.mxu1 %v5415_v1  ;;  %v5499_v1 = vld [vmem:[%s7144_s9 + $0x10] sm:$0xff]  }
 0x489   : > { %3671 = vmatpush1.bf16.msra.mxu1 %v5413_v2  ;;  %v5501_v2 = vld [vmem:[%s7144_s9 + $0x18] sm:$0xff]  }
 0x48a   : > { %3672 = vmatprep.subr.bf16.mxu1 %v5418_v3  ;;  %v5502_v3 = vld [vmem:[%s7144_s9 + $0x60] sm:$0xff]  }
 0x48d   : > { %3673 = vmatpush1.bf16.msra.mxu1 %v5416_v4  ;;  %v5503_v4 = vld [vmem:[%s7144_s9 + $0x20] sm:$0xff]  }
 0x48e   : > { %3674 = vmatprep.subr.bf16.mxu1 %v5421_v5  ;;  %v5504_v5 = vld [vmem:[%s7144_s9 + $0x68] sm:$0xff]  }
 0x491   : > { %3675 = vmatpush1.bf16.msra.mxu1 %v5419_v7  ;;  %v5505_v7 = vld [vmem:[%s7144_s9 + $0x28] sm:$0xff]  }
 0x492   : > { %3676 = vmatprep.subr.bf16.mxu1 %v5424_v8  ;;  %v5506_v8 = vld [vmem:[%s7144_s9 + $0x70] sm:$0xff]  }
 0x495   : > { %3677 = vmatpush1.bf16.msra.mxu1 %v5422_v10  ;;  %v5507_v10 = vld [vmem:[%s7144_s9 + $0x30] sm:$0xff]  }
 0x496   : > { %3678 = vmatprep.subr.bf16.mxu1 %v5427_v11  ;;  %v5508_v11 = vld [vmem:[%s7144_s9 + $0x78] sm:$0xff]  }
 0x499   : > { %3679 = vmatpush1.bf16.msra.mxu1 %v5425_v12  ;;  %v5509_v12 = vld [vmem:[%s7144_s9 + $0x38] sm:$0xff]  }
 0x49a   : > { %3680 = vmatprep.subr.bf16.mxu1 %v5430_v14  ;;  %v5510_v14 = vld [vmem:[%s7144_s9 + $0xc0] sm:$0xff]  }
 0x49d   : > { %3681 = vmatpush1.bf16.msra.mxu1 %v5428_v15  ;;  %v2916_v15 = vld [vmem:[%s7143_s8] sm:$0xf] }
 0x49e   : > { %3682 = vmatprep.subr.bf16.mxu1 %v5433_v28  ;;  %v3561_v28 = vrot.slane %v2916_v15, %v5870_v9  ;;  %v5512_v9 = vld [vmem:[%s7144_s9 + $0xc8] sm:$0xff]  }
 0x4a1   : > { %3683 = vmatpush1.bf16.msra.mxu1 %v5431_v16  ;;  %v3565_v16 = vrot.slane %v2916_v15, %v5880_v13  ;;  %v5513_v13 = vld [vmem:[%s7144_s9 + $0x88] sm:$0xff]  }
 0x4a2   : > { %3684 = vmatprep.subr.bf16.mxu1 %v5436_v17 }
 0x4a5   : > { %3685 = vmatpush1.bf16.msra.mxu1 %v5434_v18 }
 0x4a6   : > { %3686 = vmatprep.subr.bf16.mxu1 %v5439_v21 }
 0x4a9   : > { %3687 = vmatpush1.bf16.msra.mxu1 %v5437_v22 }
 0x4aa   : > { %3688 = vmatprep.subr.bf16.mxu1 %v5442_v56 }
 0x4ad   : > { %3689 = vmatpush1.bf16.msra.mxu1 %v5440_v24 }
 0x4ae   : > { %3690 = vmatprep.subr.bf16.mxu1 %v5445_v25 }
 0x4b1   : > { %3691 = vmatpush1.bf16.msra.mxu1 %v5443_v26 }
 0x4b2   : > { %3701 = vmatprep.subr.bf16.mxu1 %v5448_v27 }
 0x4b4   : > { %3693 = vmatmul.mubr.bf16.vlgmr.msra.gmra.mrb[12].mxu1 %v6669_v31  ;;  %v5457_v31 = vld [vmem:[%s7142_s7 + $0x26c] ss:$16 sps:$4 sm:$0xff]  }
 0x4b5   : > { %3702 = vmatpush1.bf16.msra.mxu1 %v5446_v30  ;;  %3733 = vmatprep.mubr.bf16.mxu1 %v6783_v58  ;;  %v5485_v58 = vld [vmem:[%s7142_s7 + $0x3a8] ss:$16 sps:$4 sm:$0xff]   ;;  %v5511_v30 = vld [vmem:[%s7144_s9 + $0x80] sm:$0xff]  }
 0x4b6   : > { %3703 = vmatprep.subr.bf16.mxu1 %v5451_v32 }
 0x4b9   : > { %3704 = vmatpush1.bf16.msra.mxu1 %v5449_v33  ;;  %v5514_v33 = vld [vmem:[%s7144_s9 + $0xd0] sm:$0xff]  }
 0x4ba   : > { %3705 = vmatprep.subr.bf16.mxu1 %v5454_v34  ;;  %v5515_v34 = vld [vmem:[%s7144_s9 + $0x90] sm:$0xff]  }
 0x4bd   : > { %3706 = vmatpush1.bf16.msra.mxu1 %v5452_v35  ;;  %v5516_v35 = vld [vmem:[%s7144_s9 + $0xd8] sm:$0xff]  }
 0x4be   : > { %3707 = vmatprep.subr.bf16.mxu1 %v5457_v31  ;;  %v5517_v31 = vld [vmem:[%s7144_s9 + $0x98] sm:$0xff]  }
 0x4c1   : > { %3708 = vmatpush1.bf16.msra.mxu1 %v5455_v36  ;;  %v5518_v36 = vld [vmem:[%s7144_s9 + $0xe0] sm:$0xff]  }
 0x4c2   : > { %3709 = vmatprep.subr.bf16.mxu1 %v5460_v37  ;;  %v5519_v37 = vld [vmem:[%s7144_s9 + $0xa0] sm:$0xff]  }
 0x4c5   : > { %3710 = vmatpush1.bf16.msra.mxu1 %v5458_v39  ;;  %v5520_v39 = vld [vmem:[%s7144_s9 + $0xe8] sm:$0xff]  }
 0x4c6   : > { %3711 = vmatprep.subr.bf16.mxu1 %v5463_v40  ;;  %v5521_v40 = vld [vmem:[%s7144_s9 + $0xa8] sm:$0xff]  }
 0x4c9   : > { %3712 = vmatpush1.bf16.msra.mxu1 %v5461_v41  ;;  %v5522_v41 = vld [vmem:[%s7144_s9 + $0xf0] sm:$0xff]  }
 0x4ca   : > { %3713 = vmatprep.subr.bf16.mxu1 %v5466_v42  ;;  %v5523_v42 = vld [vmem:[%s7144_s9 + $0xb0] sm:$0xff]  }
 0x4cd   : > { %3714 = vmatpush1.bf16.msra.mxu1 %v5464_v43  ;;  %v5524_v43 = vld [vmem:[%s7144_s9 + $0xf8] sm:$0xff]  }
 0x4ce   : > { %3715 = vmatprep.subr.bf16.mxu1 %v5469_v44  ;;  %v5525_v44 = vld [vmem:[%s7144_s9 + $0xb8] sm:$0xff]  }
 0x4d1   : > { %3716 = vmatpush1.bf16.msra.mxu1 %v5467_v45  ;;  %v3572_v45 = vsub.s32 3, %v5861_v6 }
 0x4d2   : > { %3717 = vmatprep.subr.bf16.mxu1 %v5472_v46  ;;  %v3569_v46 = vrot.slane %v2916_v15, %v5884_v20 }
 0x4d5   : > { %3718 = vmatpush1.bf16.msra.mxu1 %v5470_v47  ;;  %v3573_v47 = vrot.slane %v2916_v15, %v3572_v45 }
 0x4d6   : > { %3719 = vmatprep.subr.bf16.mxu1 %v5475_v48 }
 0x4d9   : > { %3720 = vmatpush1.bf16.msra.mxu1 %v5473_v49 }
 0x4da   : > { %3721 = vmatprep.subr.bf16.mxu1 %v5478_v50 }
 0x4dd   : > { %3722 = vmatpush1.bf16.msra.mxu1 %v5476_v51 }
 0x4de   : > { %3723 = vmatprep.subr.bf16.mxu1 %v5481_v57 }
 0x4e1   : > { %3724 = vmatpush1.bf16.msra.mxu1 %v5479_v52 }
 0x4e2   : > { %3725 = vmatprep.subr.bf16.mxu1 %v5484_v53 }
 0x4e5   : > { %3726 = vmatpush1.bf16.msra.mxu1 %v5482_v54 }
 0x4e6   : > { %3727 = vmatprep.subr.bf16.mxu1 %v5487_v55 }
 0x4e9   : > { %3728 = vmatpush1.bf16.msra.mxu1 %v5485_v58 }
 0x4ea   : > { %3729 = vmatprep.subr.bf16.mxu1 %v5490_v19 }
 0x4ed   : > { %3730 = vmatpush1.bf16.msra.mxu1 %v5488_v59 }
 0x4ee   : > { %3731 = vmatprep.subr.bf16.mxu1 %v5493_v60 }
 0x4f1   : > { %3732 = vmatpush1.bf16.msra.mxu1 %v5491_v61  ;;  %v3814_v61 = vld [vmem:[%s7145_s10] sm:$0x1] }
 0x4f2   : > { %4771 = vmatprep.subr.bf16.mxu1 %v5494_v62 }
 0x4f4   : > { %3734 = vmatmul.mubr.bf16.vlgmr.msra.gmra.mrb[12].mxu1 %v6788_v38  ;;  %v5500_v38 = vld [vmem:[%s7144_s9 + $0x58] sm:$0xff]  }
 0x4f5   : > { %4772 = vmatpush3.bf16.msra.mxu1 %v5495_v63 }
 0x4f6   : > { %4773 = vmatprep.subr.bf16.mxu1 %v5496_v29 }
 0x4f9   : > { %4774 = vmatpush3.bf16.msra.mxu1 %v5497_v0 }
 0x4fa   : > { %4775 = vmatprep.subr.bf16.mxu1 %v5498_v23 }
 0x4fd   : > { %4776 = vmatpush3.bf16.msra.mxu1 %v5499_v1 }
 0x4fe   : > { %4777 = vmatprep.subr.bf16.mxu1 %v5500_v38 }
 0x501   : > { %4778 = vmatpush3.bf16.msra.mxu1 %v5501_v2 }
 0x502   : > { %4779 = vmatprep.subr.bf16.mxu1 %v5502_v3 }
 0x505   : > { %4780 = vmatpush3.bf16.msra.mxu1 %v5503_v4 }
 0x506   : > { %4781 = vmatprep.subr.bf16.mxu1 %v5504_v5 }
 0x509   : > { %4782 = vmatpush3.bf16.msra.mxu1 %v5505_v7 }
 0x50a   : > { %4783 = vmatprep.subr.bf16.mxu1 %v5506_v8 }
 0x50d   : > { %4784 = vmatpush3.bf16.msra.mxu1 %v5507_v10 }
 0x50e   : > { %4785 = vmatprep.subr.bf16.mxu1 %v5508_v11 }
 0x511   : > { %4786 = vmatpush3.bf16.msra.mxu1 %v5509_v12 }
 0x512   : > { %4793 = vmatprep.subr.bf16.mxu1 %v5510_v14 }
 0x547   : > { %v3653_v17 = vpop.f32.mrb[8].mxu1 }
 0x548   : > { %v4851_v18 = vadd.f32 %v3653_v17, %v3561_v28  ;;  %v3655_v21 = vpop.f32.mrb[9].mxu1 }
 0x549   : > { %v4852_v22 = vadd.f32 %v3655_v21, %v3565_v16  ;;  %v3657_v56 = vpop.f32.mrb[10].mxu1 }
 0x54a   : > { %v3742_v24 = vmax.f32 %v4851_v18, 0.0  ;;  %v3658_v25 = vpop.f32.mrb[11].mxu1 }
 0x54b   : > { %v3743_v26 = vmax.f32 %v4852_v22, 0.0 }
 0x54c   : > { %v3746_v32 = vpack.c.bf16 %v3742_v24, %v3742_v24 }
 0x54d   : > { %v3747_v27 = vpack.c.bf16 %v3743_v26, %v3743_v26 }
 0x54f   : > { %4039 = vmatprep.mubr.bf16.mxu1 %v3747_v27 }
 0x550   : > { %4040 = vmatmul.mubr.bf16.vlgmr.msra.gmra.mrb[16].mxu1 %v3746_v32 }
 0x551   : > { %4794 = vmatpush3.bf16.msra.mxu1 %v5511_v30 }
 0x552   : > { %4795 = vmatprep.subr.bf16.mxu1 %v5512_v9 }
 0x555   : > { %4796 = vmatpush3.bf16.msra.mxu1 %v5513_v13 }
 0x556   : > { %4797 = vmatprep.subr.bf16.mxu1 %v5514_v33 }
 0x559   : > { %4798 = vmatpush3.bf16.msra.mxu1 %v5515_v34 }
 0x55a   : > { %4799 = vmatprep.subr.bf16.mxu1 %v5516_v35 }
 0x55d   : > { %4800 = vmatpush3.bf16.msra.mxu1 %v5517_v31 }
 0x55e   : > { %4801 = vmatprep.subr.bf16.mxu1 %v5518_v36 }
 0x561   : > { %4802 = vmatpush3.bf16.msra.mxu1 %v5519_v37 }
 0x562   : > { %4803 = vmatprep.subr.bf16.mxu1 %v5520_v39 }
 0x565   : > { %4804 = vmatpush3.bf16.msra.mxu1 %v5521_v40 }
 0x566   : > { %4805 = vmatprep.subr.bf16.mxu1 %v5522_v41 }
 0x569   : > { %4806 = vmatpush3.bf16.msra.mxu1 %v5523_v42 }
 0x56a   : > { %4807 = vmatprep.subr.bf16.mxu1 %v5524_v43 }
 0x56d   : > { %4808 = vmatpush3.bf16.msra.mxu1 %v5525_v44 }
 0x5c7   : > { %v3735_v48 = vpop.f32.mrb[12].mxu1 }
 0x5c8   : > { %v4853_v49 = vadd.f32 %v3735_v48, %v3569_v46  ;;  %v3737_v50 = vpop.f32.mrb[13].mxu1 }
 0x5c9   : > { %v4854_v51 = vadd.f32 %v3737_v50, %v3573_v47  ;;  %v3739_v57 = vpop.f32.mrb[14].mxu1 }
 0x5ca   : > { %v3744_v52 = vmax.f32 %v4853_v49, 0.0  ;;  %v3740_v53 = vpop.f32.mrb[15].mxu1 }
 0x5cb   : > { %v3745_v54 = vmax.f32 %v4854_v51, 0.0 }
 0x5cc   : > { %v3748_v58 = vpack.c.bf16 %v3744_v52, %v3744_v52 }
 0x5cd   : > { %v3749_v55 = vpack.c.bf16 %v3745_v54, %v3745_v54 }
 0x5cf   : > { %4079 = vmatprep.mubr.bf16.mxu1 %v3749_v55 }
 0x5d0   : > { %4080 = vmatmul.mubr.bf16.vlgmr.msra.gmra.mrb[20].mxu1 %v3748_v58 }
 0x623   : > { %v4787_v19 = vpop.f32.mrb[16].mxu1 }
 0x624   : > { %v4788_v59 = vpop.f32.mrb[17].mxu1 }
 0x625   : > { %v4789_v6 = vadd.f32 %v4788_v59, %v4787_v19  ;;  %v4790_v60 = vpop.f32.mrb[18].mxu1 }
 0x626   : > { %v4791_v20 = vpop.f32.mrb[19].mxu1 }
 0x627   : > { %v4042_v29 = vadd.f32 %v4789_v6, %v3814_v61 }
 0x6a3   : > { %v4809_v62 = vpop.f32.mrb[20].mxu1 }
 0x6a4   : > { %v4810_v63 = vpop.f32.mrb[21].mxu1 }
 0x6a5   : > { %v4811_v0 = vadd.f32 %v4810_v63, %v4809_v62  ;;  %v4812_v23 = vpop.f32.mrb[22].mxu1 }
 0x6a6   : > { %v4813_v1 = vpop.f32.mrb[23].mxu1 }
 0x6a7   : > { %v4082_v38 = vadd.f32 %v4811_v0, %v4042_v29 }
 0x6a9   : > { %4087 = vst [vmem:[%s378_s22] sm:$0x1] %v4082_v38 }
 0x6aa   : > { %5539 = shalt.err (!%p5536_p3)
}
 0x6ab   : > { %s5540_s13 = scalar_lea.hbm %s7093_s12, 16  ;;  %s5544_s25 = scalar_lea.hbm %s7146_s11, 32 }
 0x6ac   : > { %p5541_p4 = scmp.ne.s32.totalorder %s7093_s12, %s5540_s13  ;;  %p5545_p9 = scmp.lt.u32.totalorder %s7093_s12, %s7146_s11 }
 0x6ad   : > { %p5546_p10 = scmp.lt.u32.totalorder %s5544_s25, %s5540_s13  ;;  %p5548_p12 = scmp.lt.u32.totalorder %s5540_s13, %s7093_s12 }
 0x6ae   : > { %p5542_p7 = pnand %p5541_p4, %p5692_p5 }
 0x6af   : > { %p5547_p11 = por %p5546_p10, %p5545_p9 }
 0x6b0   : > { %p5543_p8 = pneg %p5542_p7 }
 0x6b1   : > { %p5549_p13 = por %p5548_p12, %p5547_p11 }
 0x6b3   : > { %p5550_p0 = pnand %p5549_p13, %p5543_p8 }
 0x6b5   : > { %5553 = shalt.err (!%p5550_p0)
}
 0x6b6   : > { %4887 = dma.vmem_to_hbm [thread:$0]  (%p5692_p5), %s7095_s24, 16, %s7093_s12, %s4089_s26  }
 0x6b7 PF: > { %p4893_p1 = scmp.ge.s32.totalorder %s5588_s20, 2  ;;  %s4113_s21 = sand.u32 1, %s5576_s17  }
 0x6b8   : > { %s4114_s14 = scalar_lea.sflag [#allocation3], %s4113_s21 }
 0x6b9   : > { %p4890_p2 = pnand %p4893_p1, %p5696_p6 }
 0x6bb   : > { %5571 = dma.done.wait (!%p4890_p2), %s4114_s14, 16  }
 0x6bc   : > { %5573 = vsyncadd (!%p4890_p2), %s4114_s14, 4294967280  ;;  %s7150_s15 = sld [smem:[#allocation5_spill]]  ;;  %p21_p3 = scmp.ge.s32.totalorder %s5679_s23, 4  }
 0x6bd   : > { %s7151_s17 = smov %s5580_s18  ;;  %s7152_s18 = smov %s5584_s19 }
 0x6be   : > { %s7154_s20 = smov %s5679_s23  ;;  %23 = sbr.rel (!%p21_p3) target bundleno = 3 (0x3), region = 105 }
 0x6c2   : > { %s7153_s19 = smov %s7150_s15 }
 0x6c5   :  { %4118 = vsyncpa [#allocation3], 1 }
 0x6c6   :  { %4120 = vsyncpa [#allocation3 + $0x1], 1 }

</bundles_post_ra>
